<compile_context>
chip_gen: v6e
topology: v6e:2x2x1
jax: 0.10.0
libtpu: 0.0.40
codegen_flags: <defaults>
</compile_context>

<pallas_src>
import math

import jax
import jax.numpy as jnp
from jax.experimental import pallas as pl
from jax.experimental.pallas import tpu as pltpu


def _make_mha_kernel(num_heads: int, head_dim: int):
    H, D = num_heads, head_dim
    E = H * D

    def kernel(xq_ref, xkv_ref, wq_ref, bq_ref, wkv_ref, bkv_ref, wo_ref, bo_ref,
               o_ref, k_scratch, v_scratch):
        qi = pl.program_id(1)

        # ---- K/V projection: once per batch element, persisted in VMEM scratch ----
        @pl.when(qi == 0)
        def _():
            xkv = xkv_ref[...]                                        # (S, E) bf16
            S = xkv.shape[0]
            kv = jnp.dot(xkv, wkv_ref[...],
                         preferred_element_type=jnp.float32) + bkv_ref[...]   # (S, 2E) f32
            k = kv[:, :E]
            v = kv[:, E:]
            k_scratch[...] = jnp.transpose(k.reshape(S, H, D), (1, 0, 2)).astype(jnp.bfloat16)
            v_scratch[...] = jnp.transpose(v.reshape(S, H, D), (1, 0, 2)).astype(jnp.bfloat16)

        # ---- Q projection for this query tile (scale already folded into wq/bq) ----
        xq = xq_ref[...]                                              # (tq, E) bf16
        tq = xq.shape[0]
        q = jnp.dot(xq, wq_ref[...], preferred_element_type=jnp.float32) + bq_ref[...]
        q3 = jnp.transpose(q.reshape(tq, H, D), (1, 0, 2)).astype(jnp.bfloat16)   # (H,tq,D)

        # ---- Attention: batched over heads, contracting last axes (no explicit k.T) ----
        s = jnp.einsum("hqd,hkd->hqk", q3, k_scratch[...],
                       preferred_element_type=jnp.float32)            # (H, tq, S)

        # Softmax over keys; f32 elementwise math, divide on the EUP.
        # TODO(synk): on v6e/v7x a bf16 exp (keeping max/sum in f32) would double EUP
        #             throughput; kept f32 here for v5e compatibility / tolerance.
        s = s - jnp.max(s, axis=-1, keepdims=True)
        p = jnp.exp(s)
        p = p * pl.reciprocal(jnp.sum(p, axis=-1, keepdims=True), approx=True)
        # TODO(synk): mask=None path only; the PyTorch masked_fill-after-softmax branch
        #             is not implemented.

        ctx3 = jnp.einsum("hqk,hkd->hqd", p.astype(jnp.bfloat16), v_scratch[...],
                          preferred_element_type=jnp.float32)         # (H, tq, D)
        # Note: the (H,tq,D)->(tq,E) relayout is kept (once per tile) so the output
        # projection stays a single lane-dense (tq,E)x(E,E) full-contraction matmul.
        ctx = jnp.transpose(ctx3, (1, 0, 2)).reshape(tq, E)           # (tq, E)

        y = jnp.dot(ctx.astype(jnp.bfloat16), wo_ref[...],
                    preferred_element_type=jnp.float32) + bo_ref[...]
        o_ref[...] = y.astype(o_ref.dtype)

    return kernel


def _fuse_heads_w(w):
    # (H, E, D) -> (E, H*D); head-major columns matches torch.cat(..., dim=-1) ordering.
    H, E, D = w.shape
    return jnp.transpose(w, (1, 0, 2)).reshape(E, H * D)


def _fuse_heads_b(b):
    # (H, 1, D) -> (1, H*D)
    H, _, D = b.shape
    return b.reshape(1, H * D)


def _vmem_limit_bytes(S, E, H, D, tq, out_itemsize, single_buffer_weights):
    """Estimate the kernel's resident VMEM set and return a scoped-VMEM request."""
    bf16, f32 = 2, 4
    wbuf = 1 if single_buffer_weights else 2
    weights = wbuf * (E * E + E * 2 * E + E * E) * bf16          # wq, wkv, wo
    biases = wbuf * (E + 2 * E + E) * f32
    xq = 2 * tq * E * bf16                                       # double-buffered q tile
    xkv = 2 * S * E * bf16                                       # double-buffered kv slab
    out = 2 * tq * E * out_itemsize
    kv_scratch = 2 * H * S * D * bf16                            # persistent K/V scratch
    # Transients: (S,2E) kv proj, (tq,E) q, (H,tq,S) scores+probs, (H,tq,D) ctx, (tq,E) y.
    transients = (S * 2 * E + tq * E + 2 * H * tq * S + H * tq * D + tq * E) * f32
    total = weights + biases + xq + xkv + out + kv_scratch + transients
    # 30% headroom for compiler temporaries / layout padding; clamp to a safe range
    # (above the 16/32 MiB defaults, below v7x's 64 MiB physical VMEM).
    return int(min(max(total * 1.3, 32 * 1024 * 1024), 64 * 1024 * 1024))


def multi_attention_head(x, wq, bq, wk, bk, wv, bv, wo, bo, *, tq=None):
    B, S, E = x.shape
    H, _, D = wq.shape
    assert H * D == E

    if tq is None:
        # Tune per generation: 256-512 on v5e/v6e (128 MiB VMEM), 128-256 on v7x (64 MiB).
        tq = min(S, 256)
    # TODO(synk): sequence lengths not divisible by tq would need padding + masking.
    assert S % tq == 0, "query tile must divide sequence length"
    num_q_tiles = S // tq
    scale = 1.0 / math.sqrt(D)

    # Fuse per-head weights into full-width matrices; bf16 operands for the MXU, biases f32
    # (added after f32 accumulation).  1/sqrt(D) folded into the Q projection.  K and V
    # weights fused into one (E, 2E) so K/V come from a single MXU pass.
    wq_f = (_fuse_heads_w(wq) * scale).astype(jnp.bfloat16)
    bq_f = (_fuse_heads_b(bq) * scale).astype(jnp.float32)
    wkv_f = jnp.concatenate([_fuse_heads_w(wk), _fuse_heads_w(wv)], axis=-1).astype(jnp.bfloat16)
    bkv_f = jnp.concatenate([_fuse_heads_b(bk), _fuse_heads_b(bv)], axis=-1).astype(jnp.float32)
    wo_f = wo.astype(jnp.bfloat16)
    bo_f = bo.reshape(1, E).astype(jnp.float32)

    # Cast the streamed operand once in the wrapper: halves HBM->VMEM DMA and VMEM footprint
    # for the (S, E) slab (the kernel truncates to bf16 before the MXU anyway).
    x_b = x.astype(jnp.bfloat16)

    kernel = _make_mha_kernel(H, D)

    def run(single_buffer_weights):
        def const_spec(shape):
            idx = lambda b, qi: (0,) * len(shape)
            if single_buffer_weights:
                # Constant index_map -> never re-fetched; single-buffer to halve weight VMEM.
                return pl.BlockSpec(shape, idx, pipeline_mode=pl.Buffered(buffer_count=1))
            return pl.BlockSpec(shape, idx)

        x_q_spec = pl.BlockSpec((pl.Squeezed(), tq, E), lambda b, qi: (b, qi, 0))
        x_kv_spec = pl.BlockSpec((pl.Squeezed(), S, E), lambda b, qi: (b, 0, 0))
        out_spec = pl.BlockSpec((pl.Squeezed(), tq, E), lambda b, qi: (b, qi, 0))

        return pl.pallas_call(
            kernel,
            out_shape=jax.ShapeDtypeStruct((B, S, E), x.dtype),
            grid=(B, num_q_tiles),
            in_specs=[
                x_q_spec,                                         # x, query tile
                x_kv_spec,                                        # x, full sequence (K/V)
                const_spec((E, E)), const_spec((1, E)),           # wq, bq (pre-scaled)
                const_spec((E, 2 * E)), const_spec((1, 2 * E)),   # wkv, bkv (fused K|V)
                const_spec((E, E)), const_spec((1, E)),           # wo, bo
            ],
            out_specs=out_spec,
            scratch_shapes=[
                pltpu.VMEM((H, S, D), jnp.bfloat16),              # K scratch (per batch elt)
                pltpu.VMEM((H, S, D), jnp.bfloat16),              # V scratch (per batch elt)
            ],
            compiler_params=pltpu.CompilerParams(
                # qi must be "arbitrary": K/V scratch is computed at qi == 0 and reused.
                dimension_semantics=("parallel", "arbitrary"),
                vmem_limit_bytes=_vmem_limit_bytes(S, E, H, D, tq, x.dtype.itemsize,
                                                   single_buffer_weights)),
        )(x_b, x_b, wq_f, bq_f, wkv_f, bkv_f, wo_f, bo_f)

    try:
        return run(True)
    except Exception:
        # Fallback: some JAX versions may not accept single-buffered pipeline_mode;
        # default double-buffering is functionally identical (just more weight VMEM).
        return run(False)


def multi_attention_head_ref(x, wq, bq, wk, bk, wv, bv, wo, bo):
    """Pure-JAX reference mirroring the PyTorch module (mask=None), all-f32."""
    H, E, D = wq.shape
    scale = 1.0 / math.sqrt(D)
    heads = []
    for h in range(H):
        q = x @ wq[h] + bq[h]          # (B, S, D)
        k = x @ wk[h] + bk[h]
        v = x @ wv[h] + bv[h]
        s = jnp.einsum("bsd,btd->bst", q, k) * scale
        p = jax.nn.softmax(s, axis=-1)
        heads.append(jnp.einsum("bst,btd->bsd", p, v))
    ctx = jnp.concatenate(heads, axis=-1)   # (B, S, E)
    return ctx @ wo + bo


if __name__ == "__main__":
    B, S, E, H = 2, 8, 32, 4
    D = E // H

    key = jax.random.PRNGKey(0)
    ks = jax.random.split(key, 10)
    x = jax.random.normal(ks[0], (B, S, E), dtype=jnp.float32)

    init = lambda k, shape: (jax.random.normal(k, shape, dtype=jnp.float32)
                             / math.sqrt(shape[-2] if len(shape) > 1 else 1.0))
    wq = init(ks[1], (H, E, D))
    wk = init(ks[2], (H, E, D))
    wv = init(ks[3], (H, E, D))
    bq = 0.01 * jax.random.normal(ks[4], (H, 1, D), dtype=jnp.float32)
    bk = 0.01 * jax.random.normal(ks[5], (H, 1, D), dtype=jnp.float32)
    bv = 0.01 * jax.random.normal(ks[6], (H, 1, D), dtype=jnp.float32)
    wo = init(ks[7], (E, E))
    bo = 0.01 * jax.random.normal(ks[8], (1, E), dtype=jnp.float32)

    out = multi_attention_head(x, wq, bq, wk, bk, wv, bv, wo, bo)
    out = jax.block_until_ready(out)

    ref = multi_attention_head_ref(x, wq, bq, wk, bk, wv, bv, wo, bo)
    assert out.shape == (B, S, E)
    # bf16 MXU operands + approx reciprocal -> looser tolerance than an all-f32 kernel.
    assert jnp.allclose(out, ref, atol=5e-2, rtol=5e-2), "mismatch vs pure-JAX reference"

    print("KERNEL_OK")
</pallas_src>

<mosaic_0001>
module attributes {stable_mosaic.version = 11 : i64} {
  func.func @kernel(%arg0: i32, %arg1: i32, %arg2: memref<1x8x32xbf16, #tpu.memory_space<vmem>>, %arg3: memref<1x8x32xbf16, #tpu.memory_space<vmem>>, %arg4: memref<32x32xbf16, #tpu.memory_space<vmem>>, %arg5: memref<1x32xf32, #tpu.memory_space<vmem>>, %arg6: memref<32x64xbf16, #tpu.memory_space<vmem>>, %arg7: memref<1x64xf32, #tpu.memory_space<vmem>>, %arg8: memref<32x32xbf16, #tpu.memory_space<vmem>>, %arg9: memref<1x32xf32, #tpu.memory_space<vmem>>, %arg10: memref<1x8x32xf32, #tpu.memory_space<vmem>>, %arg11: memref<4x8x8xbf16, #tpu.memory_space<vmem>>, %arg12: memref<4x8x8xbf16, #tpu.memory_space<vmem>>) attributes {dimension_semantics = [#tpu.dimension_semantics<parallel>, #tpu.dimension_semantics<arbitrary>], iteration_bounds = array<i64: 2, 1>, scalar_prefetch = 0 : i64, scratch_operands = 2 : i64, tpu.core_type = #tpu.core_type<tc>, window_params = [{transform_indices = @transform_0, window_bounds = array<i64: 1, 8, 32>}, {transform_indices = @transform_1, window_bounds = array<i64: 1, 8, 32>}, {pipeline_mode = #tpu.pipeline_mode<synchronous>, transform_indices = @transform_2, window_bounds = array<i64: 32, 32>}, {pipeline_mode = #tpu.pipeline_mode<synchronous>, transform_indices = @transform_3, window_bounds = array<i64: 1, 32>}, {pipeline_mode = #tpu.pipeline_mode<synchronous>, transform_indices = @transform_4, window_bounds = array<i64: 32, 64>}, {pipeline_mode = #tpu.pipeline_mode<synchronous>, transform_indices = @transform_5, window_bounds = array<i64: 1, 64>}, {pipeline_mode = #tpu.pipeline_mode<synchronous>, transform_indices = @transform_6, window_bounds = array<i64: 32, 32>}, {pipeline_mode = #tpu.pipeline_mode<synchronous>, transform_indices = @transform_7, window_bounds = array<i64: 1, 32>}, {transform_indices = @transform_8, window_bounds = array<i64: 1, 8, 32>}]} {
    %c0_i32 = arith.constant 0 : i32
    %0 = arith.cmpi eq, %arg1, %c0_i32 : i32
    %1 = arith.extui %0 : i1 to i32
    %c0_i32_0 = arith.constant 0 : i32
    %2 = arith.cmpi ne, %1, %c0_i32_0 : i32
    scf.if %2 {
      %c0_25 = arith.constant 0 : index
      %c0_26 = arith.constant 0 : index
      %c0_27 = arith.constant 0 : index
      %39 = vector.load %arg3[%c0_25, %c0_26, %c0_27] : memref<1x8x32xbf16, #tpu.memory_space<vmem>>, vector<1x8x32xbf16>
      %40 = vector.shape_cast %39 : vector<1x8x32xbf16> to vector<8x32xbf16>
      %c0_28 = arith.constant 0 : index
      %c0_29 = arith.constant 0 : index
      %41 = vector.load %arg6[%c0_28, %c0_29] : memref<32x64xbf16, #tpu.memory_space<vmem>>, vector<32x64xbf16>
      %cst_30 = arith.constant dense<0.000000e+00> : vector<8x64xf32>
      %42 = tpu.matmul %40, %41, %cst_30 {dimension_numbers = #tpu.dot_dimension_numbers<[1], [0], [0], [1], [0, 0, 1, 1], [], []>} : vector<8x32xbf16>, vector<32x64xbf16>, vector<8x64xf32> -> vector<8x64xf32>
      %c0_31 = arith.constant 0 : index
      %c0_32 = arith.constant 0 : index
      %43 = vector.load %arg7[%c0_31, %c0_32] : memref<1x64xf32, #tpu.memory_space<vmem>>, vector<1x64xf32>
      %44 = vector.broadcast %43 : vector<1x64xf32> to vector<8x64xf32>
      %45 = arith.addf %42, %44 : vector<8x64xf32>
      %46 = vector.extract_strided_slice %45 {offsets = [0, 0], sizes = [8, 32], strides = [1, 1]} : vector<8x64xf32> to vector<8x32xf32>
      %47 = vector.extract_strided_slice %45 {offsets = [0, 32], sizes = [8, 32], strides = [1, 1]} : vector<8x64xf32> to vector<8x32xf32>
      %48 = vector.shape_cast %46 : vector<8x32xf32> to vector<8x4x8xf32>
      %49 = tpu.transpose %48, [1, 0, 2] : vector<8x4x8xf32> -> vector<4x8x8xf32>
      %50 = arith.truncf %49 : vector<4x8x8xf32> to vector<4x8x8xbf16>
      %c0_33 = arith.constant 0 : index
      %c0_34 = arith.constant 0 : index
      %c0_35 = arith.constant 0 : index
      %51 = vector.load %arg11[%c0_33, %c0_34, %c0_35] : memref<4x8x8xbf16, #tpu.memory_space<vmem>>, vector<4x8x8xbf16>
      tpu.vector_store %arg11[%c0_33, %c0_34, %c0_35], %50 {strides = array<i32>} : memref<4x8x8xbf16, #tpu.memory_space<vmem>>, vector<4x8x8xbf16>,
      %52 = vector.shape_cast %47 : vector<8x32xf32> to vector<8x4x8xf32>
      %53 = tpu.transpose %52, [1, 0, 2] : vector<8x4x8xf32> -> vector<4x8x8xf32>
      %54 = arith.truncf %53 : vector<4x8x8xf32> to vector<4x8x8xbf16>
      %c0_36 = arith.constant 0 : index
      %c0_37 = arith.constant 0 : index
      %c0_38 = arith.constant 0 : index
      %55 = vector.load %arg12[%c0_36, %c0_37, %c0_38] : memref<4x8x8xbf16, #tpu.memory_space<vmem>>, vector<4x8x8xbf16>
      tpu.vector_store %arg12[%c0_36, %c0_37, %c0_38], %54 {strides = array<i32>} : memref<4x8x8xbf16, #tpu.memory_space<vmem>>, vector<4x8x8xbf16>,
    } else {
    }
    %c0 = arith.constant 0 : index
    %c0_1 = arith.constant 0 : index
    %c0_2 = arith.constant 0 : index
    %3 = vector.load %arg2[%c0, %c0_1, %c0_2] : memref<1x8x32xbf16, #tpu.memory_space<vmem>>, vector<1x8x32xbf16>
    %4 = vector.shape_cast %3 : vector<1x8x32xbf16> to vector<8x32xbf16>
    %c0_3 = arith.constant 0 : index
    %c0_4 = arith.constant 0 : index
    %5 = vector.load %arg4[%c0_3, %c0_4] : memref<32x32xbf16, #tpu.memory_space<vmem>>, vector<32x32xbf16>
    %cst = arith.constant dense<0.000000e+00> : vector<8x32xf32>
    %6 = tpu.matmul %4, %5, %cst {dimension_numbers = #tpu.dot_dimension_numbers<[1], [0], [0], [1], [0, 0, 1, 1], [], []>} : vector<8x32xbf16>, vector<32x32xbf16>, vector<8x32xf32> -> vector<8x32xf32>
    %c0_5 = arith.constant 0 : index
    %c0_6 = arith.constant 0 : index
    %7 = vector.load %arg5[%c0_5, %c0_6] : memref<1x32xf32, #tpu.memory_space<vmem>>, vector<1x32xf32>
    %8 = vector.broadcast %7 : vector<1x32xf32> to vector<8x32xf32>
    %9 = arith.addf %6, %8 : vector<8x32xf32>
    %10 = vector.shape_cast %9 : vector<8x32xf32> to vector<8x4x8xf32>
    %11 = tpu.transpose %10, [1, 0, 2] : vector<8x4x8xf32> -> vector<4x8x8xf32>
    %12 = arith.truncf %11 : vector<4x8x8xf32> to vector<4x8x8xbf16>
    %c0_7 = arith.constant 0 : index
    %c0_8 = arith.constant 0 : index
    %c0_9 = arith.constant 0 : index
    %13 = vector.load %arg11[%c0_7, %c0_8, %c0_9] : memref<4x8x8xbf16, #tpu.memory_space<vmem>>, vector<4x8x8xbf16>
    "tpu.trace_start"() <{level = 10 : i32, message = "hqd,hkd->hqk"}> : () -> ()
    %cst_10 = arith.constant dense<0.000000e+00> : vector<4x8x8xf32>
    %14 = tpu.matmul %12, %13, %cst_10 {dimension_numbers = #tpu.dot_dimension_numbers<[2], [2], [1], [1], [0, 0, 0, 1, 1, 1], [0], [0]>} : vector<4x8x8xbf16>, vector<4x8x8xbf16>, vector<4x8x8xf32> -> vector<4x8x8xf32>
    "tpu.trace_stop"() : () -> ()
    %cst_11 = arith.constant dense<0xFF800000> : vector<4x8xf32>
    %15 = vector.multi_reduction <maximumf>, %14, %cst_11 [2] : vector<4x8x8xf32> to vector<4x8xf32>
    %16 = vector.shape_cast %15 : vector<4x8xf32> to vector<4x8x1xf32>
    %17 = vector.broadcast %16 : vector<4x8x1xf32> to vector<4x8x8xf32>
    %18 = arith.subf %14, %17 : vector<4x8x8xf32>
    %19 = math.exp %18 : vector<4x8x8xf32>
    %cst_12 = arith.constant dense<0.000000e+00> : vector<4x8xf32>
    %20 = vector.multi_reduction <add>, %19, %cst_12 [2] : vector<4x8x8xf32> to vector<4x8xf32>
    %21 = vector.shape_cast %20 : vector<4x8xf32> to vector<4x8x1xf32>
    %22 = tpu.reciprocal %21 {approx = true} : vector<4x8x1xf32> -> vector<4x8x1xf32>
    %23 = vector.broadcast %22 : vector<4x8x1xf32> to vector<4x8x8xf32>
    %24 = arith.mulf %19, %23 : vector<4x8x8xf32>
    %25 = arith.truncf %24 : vector<4x8x8xf32> to vector<4x8x8xbf16>
    %c0_13 = arith.constant 0 : index
    %c0_14 = arith.constant 0 : index
    %c0_15 = arith.constant 0 : index
    %26 = vector.load %arg12[%c0_13, %c0_14, %c0_15] : memref<4x8x8xbf16, #tpu.memory_space<vmem>>, vector<4x8x8xbf16>
    "tpu.trace_start"() <{level = 10 : i32, message = "hqk,hkd->hqd"}> : () -> ()
    %cst_16 = arith.constant dense<0.000000e+00> : vector<4x8x8xf32>
    %27 = tpu.matmul %25, %26, %cst_16 {dimension_numbers = #tpu.dot_dimension_numbers<[2], [1], [1], [2], [0, 0, 0, 1, 1, 2], [0], [0]>} : vector<4x8x8xbf16>, vector<4x8x8xbf16>, vector<4x8x8xf32> -> vector<4x8x8xf32>
    "tpu.trace_stop"() : () -> ()
    %28 = tpu.transpose %27, [1, 0, 2] : vector<4x8x8xf32> -> vector<8x4x8xf32>
    %29 = vector.shape_cast %28 : vector<8x4x8xf32> to vector<8x32xf32>
    %30 = arith.truncf %29 : vector<8x32xf32> to vector<8x32xbf16>
    %c0_17 = arith.constant 0 : index
    %c0_18 = arith.constant 0 : index
    %31 = vector.load %arg8[%c0_17, %c0_18] : memref<32x32xbf16, #tpu.memory_space<vmem>>, vector<32x32xbf16>
    %cst_19 = arith.constant dense<0.000000e+00> : vector<8x32xf32>
    %32 = tpu.matmul %30, %31, %cst_19 {dimension_numbers = #tpu.dot_dimension_numbers<[1], [0], [0], [1], [0, 0, 1, 1], [], []>} : vector<8x32xbf16>, vector<32x32xbf16>, vector<8x32xf32> -> vector<8x32xf32>
    %c0_20 = arith.constant 0 : index
    %c0_21 = arith.constant 0 : index
    %33 = vector.load %arg9[%c0_20, %c0_21] : memref<1x32xf32, #tpu.memory_space<vmem>>, vector<1x32xf32>
    %34 = vector.broadcast %33 : vector<1x32xf32> to vector<8x32xf32>
    %35 = arith.addf %32, %34 : vector<8x32xf32>
    %c0_22 = arith.constant 0 : index
    %c0_23 = arith.constant 0 : index
    %c0_24 = arith.constant 0 : index
    %36 = vector.load %arg10[%c0_22, %c0_23, %c0_24] : memref<1x8x32xf32, #tpu.memory_space<vmem>>, vector<1x8x32xf32>
    %37 = vector.shape_cast %36 : vector<1x8x32xf32> to vector<8x32xf32>
    %38 = vector.shape_cast %35 : vector<8x32xf32> to vector<1x8x32xf32>
    tpu.vector_store %arg10[%c0_22, %c0_23, %c0_24], %38 {strides = array<i32>} : memref<1x8x32xf32, #tpu.memory_space<vmem>>, vector<1x8x32xf32>,
    return
  }
  func.func @transform_0(%arg0: i32, %arg1: i32) -> (i32, i32, i32) {
    %c0_i32 = arith.constant 0 : i32
    %c0_i32_0 = arith.constant 0 : i32
    return %arg0, %arg1, %c0_i32 : i32, i32, i32
  }
  func.func @transform_1(%arg0: i32, %arg1: i32) -> (i32, i32, i32) {
    %c0_i32 = arith.constant 0 : i32
    %c0_i32_0 = arith.constant 0 : i32
    %c0_i32_1 = arith.constant 0 : i32
    return %arg0, %c0_i32, %c0_i32_0 : i32, i32, i32
  }
  func.func @transform_2(%arg0: i32, %arg1: i32) -> (i32, i32) {
    %c0_i32 = arith.constant 0 : i32
    %c0_i32_0 = arith.constant 0 : i32
    %c0_i32_1 = arith.constant 0 : i32
    return %c0_i32, %c0_i32_0 : i32, i32
  }
  func.func @transform_3(%arg0: i32, %arg1: i32) -> (i32, i32) {
    %c0_i32 = arith.constant 0 : i32
    %c0_i32_0 = arith.constant 0 : i32
    %c0_i32_1 = arith.constant 0 : i32
    return %c0_i32, %c0_i32_0 : i32, i32
  }
  func.func @transform_4(%arg0: i32, %arg1: i32) -> (i32, i32) {
    %c0_i32 = arith.constant 0 : i32
    %c0_i32_0 = arith.constant 0 : i32
    %c0_i32_1 = arith.constant 0 : i32
    return %c0_i32, %c0_i32_0 : i32, i32
  }
  func.func @transform_5(%arg0: i32, %arg1: i32) -> (i32, i32) {
    %c0_i32 = arith.constant 0 : i32
    %c0_i32_0 = arith.constant 0 : i32
    %c0_i32_1 = arith.constant 0 : i32
    return %c0_i32, %c0_i32_0 : i32, i32
  }
  func.func @transform_6(%arg0: i32, %arg1: i32) -> (i32, i32) {
    %c0_i32 = arith.constant 0 : i32
    %c0_i32_0 = arith.constant 0 : i32
    %c0_i32_1 = arith.constant 0 : i32
    return %c0_i32, %c0_i32_0 : i32, i32
  }
  func.func @transform_7(%arg0: i32, %arg1: i32) -> (i32, i32) {
    %c0_i32 = arith.constant 0 : i32
    %c0_i32_0 = arith.constant 0 : i32
    %c0_i32_1 = arith.constant 0 : i32
    return %c0_i32, %c0_i32_0 : i32, i32
  }
  func.func @transform_8(%arg0: i32, %arg1: i32) -> (i32, i32, i32) {
    %c0_i32 = arith.constant 0 : i32
    %c0_i32_0 = arith.constant 0 : i32
    return %arg0, %arg1, %c0_i32 : i32, i32, i32
  }
}

module attributes {stable_mosaic.version = 11 : i64} {
  func.func @kernel(%arg0: i32, %arg1: i32, %arg2: memref<1x8x32xbf16, #tpu.memory_space<vmem>>, %arg3: memref<1x8x32xbf16, #tpu.memory_space<vmem>>, %arg4: memref<32x32xbf16, #tpu.memory_space<vmem>>, %arg5: memref<1x32xf32, #tpu.memory_space<vmem>>, %arg6: memref<32x64xbf16, #tpu.memory_space<vmem>>, %arg7: memref<1x64xf32, #tpu.memory_space<vmem>>, %arg8: memref<32x32xbf16, #tpu.memory_space<vmem>>, %arg9: memref<1x32xf32, #tpu.memory_space<vmem>>, %arg10: memref<1x8x32xf32, #tpu.memory_space<vmem>>, %arg11: memref<4x8x8xbf16, #tpu.memory_space<vmem>>, %arg12: memref<4x8x8xbf16, #tpu.memory_space<vmem>>) attributes {dimension_semantics = [#tpu.dimension_semantics<parallel>, #tpu.dimension_semantics<arbitrary>], iteration_bounds = array<i64: 2, 1>, scalar_prefetch = 0 : i64, scratch_operands = 2 : i64, tpu.core_type = #tpu.core_type<tc>, window_params = [{transform_indices = @transform_0, window_bounds = array<i64: 1, 8, 32>}, {transform_indices = @transform_1, window_bounds = array<i64: 1, 8, 32>}, {pipeline_mode = #tpu.pipeline_mode<synchronous>, transform_indices = @transform_2, window_bounds = array<i64: 32, 32>}, {pipeline_mode = #tpu.pipeline_mode<synchronous>, transform_indices = @transform_3, window_bounds = array<i64: 1, 32>}, {pipeline_mode = #tpu.pipeline_mode<synchronous>, transform_indices = @transform_4, window_bounds = array<i64: 32, 64>}, {pipeline_mode = #tpu.pipeline_mode<synchronous>, transform_indices = @transform_5, window_bounds = array<i64: 1, 64>}, {pipeline_mode = #tpu.pipeline_mode<synchronous>, transform_indices = @transform_6, window_bounds = array<i64: 32, 32>}, {pipeline_mode = #tpu.pipeline_mode<synchronous>, transform_indices = @transform_7, window_bounds = array<i64: 1, 32>}, {transform_indices = @transform_8, window_bounds = array<i64: 1, 8, 32>}]} {
    %c0_i32 = arith.constant 0 : i32
    %0 = arith.cmpi eq, %arg1, %c0_i32 : i32
    %1 = arith.extui %0 : i1 to i32
    %c0_i32_0 = arith.constant 0 : i32
    %2 = arith.cmpi ne, %1, %c0_i32_0 : i32
    scf.if %2 {
      %c0_25 = arith.constant 0 : index
      %c0_26 = arith.constant 0 : index
      %c0_27 = arith.constant 0 : index
      %39 = vector.load %arg3[%c0_25, %c0_26, %c0_27] : memref<1x8x32xbf16, #tpu.memory_space<vmem>>, vector<1x8x32xbf16>
      %40 = vector.shape_cast %39 : vector<1x8x32xbf16> to vector<8x32xbf16>
      %c0_28 = arith.constant 0 : index
      %c0_29 = arith.constant 0 : index
      %41 = vector.load %arg6[%c0_28, %c0_29] : memref<32x64xbf16, #tpu.memory_space<vmem>>, vector<32x64xbf16>
      %cst_30 = arith.constant dense<0.000000e+00> : vector<8x64xf32>
      %42 = tpu.matmul %40, %41, %cst_30 {dimension_numbers = #tpu.dot_dimension_numbers<[1], [0], [0], [1], [0, 0, 1, 1], [], []>} : vector<8x32xbf16>, vector<32x64xbf16>, vector<8x64xf32> -> vector<8x64xf32>
      %c0_31 = arith.constant 0 : index
      %c0_32 = arith.constant 0 : index
      %43 = vector.load %arg7[%c0_31, %c0_32] : memref<1x64xf32, #tpu.memory_space<vmem>>, vector<1x64xf32>
      %44 = vector.broadcast %43 : vector<1x64xf32> to vector<8x64xf32>
      %45 = arith.addf %42, %44 : vector<8x64xf32>
      %46 = vector.extract_strided_slice %45 {offsets = [0, 0], sizes = [8, 32], strides = [1, 1]} : vector<8x64xf32> to vector<8x32xf32>
      %47 = vector.extract_strided_slice %45 {offsets = [0, 32], sizes = [8, 32], strides = [1, 1]} : vector<8x64xf32> to vector<8x32xf32>
      %48 = vector.shape_cast %46 : vector<8x32xf32> to vector<8x4x8xf32>
      %49 = tpu.transpose %48, [1, 0, 2] : vector<8x4x8xf32> -> vector<4x8x8xf32>
      %50 = arith.truncf %49 : vector<4x8x8xf32> to vector<4x8x8xbf16>
      %c0_33 = arith.constant 0 : index
      %c0_34 = arith.constant 0 : index
      %c0_35 = arith.constant 0 : index
      %51 = vector.load %arg11[%c0_33, %c0_34, %c0_35] : memref<4x8x8xbf16, #tpu.memory_space<vmem>>, vector<4x8x8xbf16>
      tpu.vector_store %arg11[%c0_33, %c0_34, %c0_35], %50 {strides = array<i32>} : memref<4x8x8xbf16, #tpu.memory_space<vmem>>, vector<4x8x8xbf16>,
      %52 = vector.shape_cast %47 : vector<8x32xf32> to vector<8x4x8xf32>
      %53 = tpu.transpose %52, [1, 0, 2] : vector<8x4x8xf32> -> vector<4x8x8xf32>
      %54 = arith.truncf %53 : vector<4x8x8xf32> to vector<4x8x8xbf16>
      %c0_36 = arith.constant 0 : index
      %c0_37 = arith.constant 0 : index
      %c0_38 = arith.constant 0 : index
      %55 = vector.load %arg12[%c0_36, %c0_37, %c0_38] : memref<4x8x8xbf16, #tpu.memory_space<vmem>>, vector<4x8x8xbf16>
      tpu.vector_store %arg12[%c0_36, %c0_37, %c0_38], %54 {strides = array<i32>} : memref<4x8x8xbf16, #tpu.memory_space<vmem>>, vector<4x8x8xbf16>,
    } else {
    }
    %c0 = arith.constant 0 : index
    %c0_1 = arith.constant 0 : index
    %c0_2 = arith.constant 0 : index
    %3 = vector.load %arg2[%c0, %c0_1, %c0_2] : memref<1x8x32xbf16, #tpu.memory_space<vmem>>, vector<1x8x32xbf16>
    %4 = vector.shape_cast %3 : vector<1x8x32xbf16> to vector<8x32xbf16>
    %c0_3 = arith.constant 0 : index
    %c0_4 = arith.constant 0 : index
    %5 = vector.load %arg4[%c0_3, %c0_4] : memref<32x32xbf16, #tpu.memory_space<vmem>>, vector<32x32xbf16>
    %cst = arith.constant dense<0.000000e+00> : vector<8x32xf32>
    %6 = tpu.matmul %4, %5, %cst {dimension_numbers = #tpu.dot_dimension_numbers<[1], [0], [0], [1], [0, 0, 1, 1], [], []>} : vector<8x32xbf16>, vector<32x32xbf16>, vector<8x32xf32> -> vector<8x32xf32>
    %c0_5 = arith.constant 0 : index
    %c0_6 = arith.constant 0 : index
    %7 = vector.load %arg5[%c0_5, %c0_6] : memref<1x32xf32, #tpu.memory_space<vmem>>, vector<1x32xf32>
    %8 = vector.broadcast %7 : vector<1x32xf32> to vector<8x32xf32>
    %9 = arith.addf %6, %8 : vector<8x32xf32>
    %10 = vector.shape_cast %9 : vector<8x32xf32> to vector<8x4x8xf32>
    %11 = tpu.transpose %10, [1, 0, 2] : vector<8x4x8xf32> -> vector<4x8x8xf32>
    %12 = arith.truncf %11 : vector<4x8x8xf32> to vector<4x8x8xbf16>
    %c0_7 = arith.constant 0 : index
    %c0_8 = arith.constant 0 : index
    %c0_9 = arith.constant 0 : index
    %13 = vector.load %arg11[%c0_7, %c0_8, %c0_9] : memref<4x8x8xbf16, #tpu.memory_space<vmem>>, vector<4x8x8xbf16>
    "tpu.trace_start"() <{level = 10 : i32, message = "hqd,hkd->hqk"}> : () -> ()
    %cst_10 = arith.constant dense<0.000000e+00> : vector<4x8x8xf32>
    %14 = tpu.matmul %12, %13, %cst_10 {dimension_numbers = #tpu.dot_dimension_numbers<[2], [2], [1], [1], [0, 0, 0, 1, 1, 1], [0], [0]>} : vector<4x8x8xbf16>, vector<4x8x8xbf16>, vector<4x8x8xf32> -> vector<4x8x8xf32>
    "tpu.trace_stop"() : () -> ()
    %cst_11 = arith.constant dense<0xFF800000> : vector<4x8xf32>
    %15 = vector.multi_reduction <maximumf>, %14, %cst_11 [2] : vector<4x8x8xf32> to vector<4x8xf32>
    %16 = vector.shape_cast %15 : vector<4x8xf32> to vector<4x8x1xf32>
    %17 = vector.broadcast %16 : vector<4x8x1xf32> to vector<4x8x8xf32>
    %18 = arith.subf %14, %17 : vector<4x8x8xf32>
    %19 = math.exp %18 : vector<4x8x8xf32>
    %cst_12 = arith.constant dense<0.000000e+00> : vector<4x8xf32>
    %20 = vector.multi_reduction <add>, %19, %cst_12 [2] : vector<4x8x8xf32> to vector<4x8xf32>
    %21 = vector.shape_cast %20 : vector<4x8xf32> to vector<4x8x1xf32>
    %22 = tpu.reciprocal %21 {approx = true} : vector<4x8x1xf32> -> vector<4x8x1xf32>
    %23 = vector.broadcast %22 : vector<4x8x1xf32> to vector<4x8x8xf32>
    %24 = arith.mulf %19, %23 : vector<4x8x8xf32>
    %25 = arith.truncf %24 : vector<4x8x8xf32> to vector<4x8x8xbf16>
    %c0_13 = arith.constant 0 : index
    %c0_14 = arith.constant 0 : index
    %c0_15 = arith.constant 0 : index
    %26 = vector.load %arg12[%c0_13, %c0_14, %c0_15] : memref<4x8x8xbf16, #tpu.memory_space<vmem>>, vector<4x8x8xbf16>
    "tpu.trace_start"() <{level = 10 : i32, message = "hqk,hkd->hqd"}> : () -> ()
    %cst_16 = arith.constant dense<0.000000e+00> : vector<4x8x8xf32>
    %27 = tpu.matmul %25, %26, %cst_16 {dimension_numbers = #tpu.dot_dimension_numbers<[2], [1], [1], [2], [0, 0, 0, 1, 1, 2], [0], [0]>} : vector<4x8x8xbf16>, vector<4x8x8xbf16>, vector<4x8x8xf32> -> vector<4x8x8xf32>
    "tpu.trace_stop"() : () -> ()
    %28 = tpu.transpose %27, [1, 0, 2] : vector<4x8x8xf32> -> vector<8x4x8xf32>
    %29 = vector.shape_cast %28 : vector<8x4x8xf32> to vector<8x32xf32>
    %30 = arith.truncf %29 : vector<8x32xf32> to vector<8x32xbf16>
    %c0_17 = arith.constant 0 : index
    %c0_18 = arith.constant 0 : index
    %31 = vector.load %arg8[%c0_17, %c0_18] : memref<32x32xbf16, #tpu.memory_space<vmem>>, vector<32x32xbf16>
    %cst_19 = arith.constant dense<0.000000e+00> : vector<8x32xf32>
    %32 = tpu.matmul %30, %31, %cst_19 {dimension_numbers = #tpu.dot_dimension_numbers<[1], [0], [0], [1], [0, 0, 1, 1], [], []>} : vector<8x32xbf16>, vector<32x32xbf16>, vector<8x32xf32> -> vector<8x32xf32>
    %c0_20 = arith.constant 0 : index
    %c0_21 = arith.constant 0 : index
    %33 = vector.load %arg9[%c0_20, %c0_21] : memref<1x32xf32, #tpu.memory_space<vmem>>, vector<1x32xf32>
    %34 = vector.broadcast %33 : vector<1x32xf32> to vector<8x32xf32>
    %35 = arith.addf %32, %34 : vector<8x32xf32>
    %c0_22 = arith.constant 0 : index
    %c0_23 = arith.constant 0 : index
    %c0_24 = arith.constant 0 : index
    %36 = vector.load %arg10[%c0_22, %c0_23, %c0_24] : memref<1x8x32xf32, #tpu.memory_space<vmem>>, vector<1x8x32xf32>
    %37 = vector.shape_cast %36 : vector<1x8x32xf32> to vector<8x32xf32>
    %38 = vector.shape_cast %35 : vector<8x32xf32> to vector<1x8x32xf32>
    tpu.vector_store %arg10[%c0_22, %c0_23, %c0_24], %38 {strides = array<i32>} : memref<1x8x32xf32, #tpu.memory_space<vmem>>, vector<1x8x32xf32>,
    return
  }
  func.func @transform_0(%arg0: i32, %arg1: i32) -> (i32, i32, i32) {
    %c0_i32 = arith.constant 0 : i32
    %c0_i32_0 = arith.constant 0 : i32
    return %arg0, %arg1, %c0_i32 : i32, i32, i32
  }
  func.func @transform_1(%arg0: i32, %arg1: i32) -> (i32, i32, i32) {
    %c0_i32 = arith.constant 0 : i32
    %c0_i32_0 = arith.constant 0 : i32
    %c0_i32_1 = arith.constant 0 : i32
    return %arg0, %c0_i32, %c0_i32_0 : i32, i32, i32
  }
  func.func @transform_2(%arg0: i32, %arg1: i32) -> (i32, i32) {
    %c0_i32 = arith.constant 0 : i32
    %c0_i32_0 = arith.constant 0 : i32
    %c0_i32_1 = arith.constant 0 : i32
    return %c0_i32, %c0_i32_0 : i32, i32
  }
  func.func @transform_3(%arg0: i32, %arg1: i32) -> (i32, i32) {
    %c0_i32 = arith.constant 0 : i32
    %c0_i32_0 = arith.constant 0 : i32
    %c0_i32_1 = arith.constant 0 : i32
    return %c0_i32, %c0_i32_0 : i32, i32
  }
  func.func @transform_4(%arg0: i32, %arg1: i32) -> (i32, i32) {
    %c0_i32 = arith.constant 0 : i32
    %c0_i32_0 = arith.constant 0 : i32
    %c0_i32_1 = arith.constant 0 : i32
    return %c0_i32, %c0_i32_0 : i32, i32
  }
  func.func @transform_5(%arg0: i32, %arg1: i32) -> (i32, i32) {
    %c0_i32 = arith.constant 0 : i32
    %c0_i32_0 = arith.constant 0 : i32
    %c0_i32_1 = arith.constant 0 : i32
    return %c0_i32, %c0_i32_0 : i32, i32
  }
  func.func @transform_6(%arg0: i32, %arg1: i32) -> (i32, i32) {
    %c0_i32 = arith.constant 0 : i32
    %c0_i32_0 = arith.constant 0 : i32
    %c0_i32_1 = arith.constant 0 : i32
    return %c0_i32, %c0_i32_0 : i32, i32
  }
  func.func @transform_7(%arg0: i32, %arg1: i32) -> (i32, i32) {
    %c0_i32 = arith.constant 0 : i32
    %c0_i32_0 = arith.constant 0 : i32
    %c0_i32_1 = arith.constant 0 : i32
    return %c0_i32, %c0_i32_0 : i32, i32
  }
  func.func @transform_8(%arg0: i32, %arg1: i32) -> (i32, i32, i32) {
    %c0_i32 = arith.constant 0 : i32
    %c0_i32_0 = arith.constant 0 : i32
    return %arg0, %arg1, %c0_i32 : i32, i32, i32
  }
}

</mosaic_0001>

<bundles_post_ra>
// kernel: tpu_custom_call.1
= control target key start
LH: loop header
LB: loop body
LE: loop exit
PB: predicated region body
PF: predicated region fallthrough
CT: control target
= control target key end

     0   :  { %s2788_s0 = inlined_call_operand.hbm [shape: bf16[2,8,32], index: 0, kind: input, shape index: {}]   ;;  %s2789_s1 = inlined_call_operand.hbm [shape: bf16[2,8,32], index: 1, kind: input, shape index: {}]   ;;  %s2790_s2 = inlined_call_operand.hbm [shape: bf16[32,32], index: 2, kind: input, shape index: {}]   ;;  %s2791_s3 = inlined_call_operand.vmem [shape: f32[1,32], index: 3, kind: input, shape index: {}]   ;;  %s2792_s4 = inlined_call_operand.hbm [shape: bf16[32,64], index: 4, kind: input, shape index: {}]   ;;  %s2793_s5 = inlined_call_operand.vmem [shape: f32[1,64], index: 5, kind: input, shape index: {}]   ;;  %s2794_s6 = inlined_call_operand.hbm [shape: bf16[32,32], index: 6, kind: input, shape index: {}]   ;;  %s2795_s7 = inlined_call_operand.vmem [shape: f32[1,32], index: 7, kind: input, shape index: {}]   ;;  %s2796_s8 = inlined_call_operand.hbm [shape: f32[2,8,32], index: 8, kind: output, shape index: {}]  }
   0x1   :  { %2801 = sst [smem:[#allocation21_spill]] %s2788_s0 }
   0x2   :  { %2802 = sst [smem:[#allocation22_spill]] %s2790_s2 }
   0x3   :  { %2803 = sst [smem:[#allocation23_spill]] %s2792_s4 }
   0x4   :  { %2804 = sst [smem:[#allocation24_spill]] %s2794_s6 }
   0x5   :  { %13 = vsyncpa [#allocation5], 0 }
   0x6   :  { %15 = vsyncpa [#allocation5 + $0x1], 0 }
   0x7   :  { %16 = vsyncpa [#allocation8], 0 }
   0x8   :  { %18 = vsyncpa [#allocation8 + $0x1], 0 }
   0x9   :  { %19 = vsyncpa [#allocation11], 0 }
   0xa   :  { %20 = vsyncpa [#allocation6], 0 }
   0xb   :  { %22 = vsyncpa [#allocation6 + $0x1], 0  ;;  %s2385_s27 = smov 0   ;;  %s2387_s28 = smov 0  }
   0xc   :  { %s2389_s29 = smov 0   ;;  %s2391_s30 = smov 0  }
   0xd   :  { %s2393_s9 = smov 0   ;;  %s2395_s10 = smov 0  }
   0xe LB: > { %s2416_s11 = sadd.s32 4294967295, %s2319_s10   ;;  %s1814_s12 = sadd.s32 4294967294, %s2319_s10   ;;  %s2319_s10 = sphi %s2395_s10, %s28_s10   ;;  %s2315_s9 = sphi %s2393_s9, %s2831_s9   ;;  %s2311_s30 = sphi %s2391_s30, %s2830_s30   ;;  %s2307_s29 = sphi %s2389_s29, %s2829_s29   ;;  %s2303_s28 = sphi %s2387_s28, %s2828_s28   ;;  %s2299_s27 = sphi %s2385_s27, %s2827_s27  }
   0xf   : > { %p62_p0 = scmp.ne.s32.totalorder %s2303_s28, %s2299_s27  ;;  %p2797_p1 = scmp.eq.s32.totalorder %s2416_s11, 0 }
  0x10   : > { %p246_p3 = scmp.eq.s32.totalorder %s1814_s12, 1  ;;  %p1815_p5 = scmp.ge.s32.totalorder %s2319_s10, 1 }
  0x11   : > { %p2425_p4 = por %p2797_p1, %p62_p0  ;;  %p253_p7 = scmp.lt.s32.totalorder %s2319_s10, 3 }
  0x12   : > { %p2430_p6 = por %p246_p3, %p62_p0  ;;  %s2321_s16 = smov [#allocation9]  }
  0x13   : > { %s2805_s13 = scalar_select %p2425_p4, 1, 0 }
  0x14   : > { %s2806_s14 = scalar_select %p2430_p6, 1, 0 }
  0x15   : > { %p2435_p8 = pnand %p1815_p5, %p253_p7  ;;  %s265_s17 = sshll.u32 %s2321_s16, 4  ;;  %s266_s17 = int_to_ptr.vmem [resolvable:$true] %s265_s17 }
  0x16   : > { %2807 = sst [smem:[#allocation19_spill]] %s2806_s14  ;;  %s2322_s19 = smov [#allocation10]  }
  0x17   : > { %p1978_p9 = pneg %p2435_p8  ;;  %s281_s20 = sshll.u32 %s2322_s19, 4  ;;  %s282_s20 = int_to_ptr.vmem [resolvable:$true] %s281_s20 }
  0x18   : > { %s2323_s21 = smov [#allocation12]   ;;  %s2104_s23 = scalar_lea.vmem %s266_s17, 256 }
  0x19   : > { %p2444_p11 = pnand %p1978_p9, %p2797_p1  ;;  %s297_s22 = sshll.u32 %s2323_s21, 4  ;;  %s298_s22 = int_to_ptr.vmem [resolvable:$true] %s297_s22 }
  0x1a   : > { %p2105_p13 = scmp.ne.s32.totalorder %s266_s17, %s2104_s23  ;;  %p2112_p5 = scmp.lt.s32.totalorder %s266_s17, %s266_s17 }
  0x1b   : > { %p2095_p12 = pneg %p2444_p11  ;;  %p2113_p7 = scmp.lt.s32.totalorder %s2104_s23, %s2104_s23 }
  0x1d   : > { %p2107_p0 = pnand %p2105_p13, %p2095_p12  ;;  %p2114_p9 = por %p2113_p7, %p2112_p5 }
  0x1f   : > { %p2108_p3 = pneg %p2107_p0 }
  0x21   : > { %p2115_p10 = pnand %p2114_p9, %p2108_p3 }
  0x23   : > { %2118 = shalt.err (!%p2115_p10)
}
  0x24   : > { %s2324_s24 = smov 64   ;;  %s2325_s25 = smov 4  }
  0x25   : > { %s2810_s2 = sld [smem:[#allocation22_spill]]  ;;  %s2130_s16 = scalar_lea.vmem %s282_s20, 256 }
  0x26   : > { %p2131_p1 = scmp.ne.s32.totalorder %s282_s20, %s2130_s16  ;;  %p2138_p2 = scmp.lt.s32.totalorder %s282_s20, %s282_s20 }
  0x27   : > { %p2139_p6 = scmp.lt.s32.totalorder %s2130_s16, %s2130_s16 }
  0x28   : > { %p2133_p13 = pnand %p2131_p1, %p2095_p12 }
  0x29   : > { %p2140_p5 = por %p2139_p6, %p2138_p2 }
  0x2a   : > { %p2134_p0 = pneg %p2133_p13 }
  0x2b   : > { %1981 = dma.hbm_to_vmem [thread:$0]  (!%p2444_p11), %s2810_s2, 256, %s266_s17, [#allocation8], %s2324_s24, %s2324_s24, %s2325_s25  }
  0x2c   : > { %p2141_p3 = pnand %p2140_p5, %p2134_p0 }
  0x2e   : > { %2144 = shalt.err (!%p2141_p3)
}
  0x2f   : > { %s2811_s4 = sld [smem:[#allocation23_spill]]  ;;  %s2156_s17 = scalar_lea.vmem %s298_s22, 256 }
  0x30   : > { %p2157_p10 = scmp.ne.s32.totalorder %s298_s22, %s2156_s17  ;;  %p2164_p9 = scmp.lt.s32.totalorder %s298_s22, %s298_s22 }
  0x31   : > { %p2165_p13 = scmp.lt.s32.totalorder %s2156_s17, %s2156_s17 }
  0x32   : > { %p2159_p7 = pnand %p2157_p10, %p2095_p12 }
  0x33   : > { %p2166_p4 = por %p2165_p13, %p2164_p9 }
  0x34   : > { %p2160_p1 = pneg %p2159_p7 }
  0x35   : > { %1984 = dma.hbm_to_vmem [thread:$0]  (!%p2444_p11), %s2811_s4, 256, %s282_s20, [#allocation11], %s2324_s24, %s2324_s24, %s2325_s25  }
  0x36   : > { %p2167_p2 = pnand %p2166_p4, %p2160_p1 }
  0x38   : > { %2170 = shalt.err (!%p2167_p2)
}
  0x39   : > { %s2812_s6 = sld [smem:[#allocation24_spill]]  ;;  %s49_s20 = sadd.s32 1, %s2307_s29 }
  0x3a   : > { %s40_s12 = sadd.s32 1, %s2315_s9  ;;  %p56_p4 = scmp.ne.s32.totalorder %s2307_s29, %s2303_s28 }
  0x3b   : > { %p42_p6 = scmp.ge.s32.totalorder %s40_s12, 2  ;;  %p57_p12 = scmp.eq.s32.totalorder %s2319_s10, 0 }
  0x3c   : > { %p2813_p0 = scmp.eq.s32.totalorder %s2416_s11, 1  ;;  %p2002_p3 = scmp.lt.s32.totalorder %s2319_s10, 2 }
  0x3d   : > { %s2833_s12 = smov (%p42_p6, %s40_s12), 0  ;;  %p58_p10 = por %p57_p12, %p56_p4 }
  0x3e   : > { %p2481_p5 = por %p2813_p0, %p56_p4  ;;  %2815 = sst [smem:[#allocation20_spill]] %s2833_s12 }
  0x3f   : > { %1987 = dma.hbm_to_vmem [thread:$0]  (!%p2444_p11), %s2812_s6, 256, %s298_s22, [#allocation11], %s2324_s24, %s2324_s24, %s2325_s25  }
  0x40   : > { %s314_s16 = sand.u32 1, %s2307_s29   ;;  %s44_s19 = ssub.s32 %s2315_s9, %s2833_s12 }
  0x41   : > { %p47_p11 = scmp.eq.s32.totalorder %s44_s19, 0  ;;  %s1820_s22 = sshll.u32 %s314_s16, 2 }
  0x42   : > { %s1821_s24 = sshll.u32 %s2315_s9, 6  ;;  %s2816_s0 = sld [smem:[#allocation21_spill]] }
  0x43   : > { %s2493_s25 = scalar_select %p47_p11, %s2307_s29, %s49_s20  }
  0x44   : > { %s318_s26 = scalar_lea.vmem [#allocation4], %s1820_s22  ;;  %p2500_p7 = pnand %p2002_p3, %p58_p10 }
  0x45   : > { %s326_s2 = sshll.u32 %s318_s26, 4  ;;  %s2507_s19 = scalar_lea.hbm %s2789_s1, %s1821_s24  ;;  %s327_s2 = int_to_ptr.vmem [resolvable:$true] %s326_s2 }
  0x46   : > { %s333_s20 = sand.u32 1, %s2319_s10   ;;  %s315_s12 = scalar_lea.sflag [#allocation5], %s314_s16 }
  0x47   : > { %p2173_p1 = pneg %p2500_p7  ;;  %s2184_s21 = scalar_lea.vmem %s327_s2, 64 }
  0x48   : > { %s324_s23 = scalar_lea.hbm %s2816_s0, %s1821_s24  ;;  %p2185_p9 = scmp.ne.s32.totalorder %s327_s2, %s2184_s21 }
  0x49   : > { %s2326_s17 = smov [#allocation4]  }
  0x4a   : > { %p2187_p13 = pnand %p2185_p9, %p2173_p1  ;;  %s2189_s26 = sshll.u32 %s2326_s17, 4  ;;  %s2190_s26 = int_to_ptr.vmem [resolvable:$false] %s2189_s26 }
  0x4b   : > { %s2191_s0 = scalar_lea.vmem %s2190_s26, 128  ;;  %p2192_p4 = scmp.lt.s32.totalorder %s327_s2, %s2190_s26 }
  0x4c   : > { %p2188_p2 = pneg %p2187_p13  ;;  %p2193_p6 = scmp.lt.s32.totalorder %s2191_s0, %s2184_s21 }
  0x4e   : > { %p2194_p12 = por %p2193_p6, %p2192_p4 }
  0x50   : > { %p2195_p0 = pnand %p2194_p12, %p2188_p2 }
  0x52   : > { %2198 = shalt.err (!%p2195_p0)
}
  0x53   : > { %1991 = dma.hbm_to_vmem [thread:$0]  (!%p2500_p7), %s324_s23, 64, %s327_s2, %s315_s12  }
  0x54   : > { %s337_s6 = scalar_lea.vmem [#allocation7], %s1820_s22  ;;  %s334_s16 = scalar_lea.sflag [#allocation8], %s333_s20 }
  0x55   : > { %s344_s14 = sshll.u32 %s337_s6, 4  ;;  %s2327_s17 = smov [#allocation7]   ;;  %s345_s14 = int_to_ptr.vmem [resolvable:$true] %s344_s14 }
  0x56   : > { %s2212_s24 = scalar_lea.vmem %s345_s14, 64  ;;  %s2217_s26 = sshll.u32 %s2327_s17, 4  ;;  %s2218_s26 = int_to_ptr.vmem [resolvable:$false] %s2217_s26 }
  0x57   : > { %p2213_p3 = scmp.ne.s32.totalorder %s345_s14, %s2212_s24  ;;  %s2219_s0 = scalar_lea.vmem %s2218_s26, 128 }
  0x58   : > { %p2220_p9 = scmp.lt.s32.totalorder %s345_s14, %s2218_s26  ;;  %p2221_p13 = scmp.lt.s32.totalorder %s2219_s0, %s2212_s24 }
  0x59   : > { %p2215_p10 = pnand %p2213_p3, %p2173_p1 }
  0x5a   : > { %p2222_p2 = por %p2221_p13, %p2220_p9 }
  0x5b   : > { %p2216_p11 = pneg %p2215_p10 }
  0x5d   : > { %p2223_p4 = pnand %p2222_p2, %p2216_p11 }
  0x5f   : > { %2226 = shalt.err (!%p2223_p4)
}
  0x60   : > { %1994 = dma.hbm_to_vmem [thread:$0]  (!%p2500_p7), %s2507_s19, 64, %s345_s14, %s334_s16  }
  0x61   : > { %353 = sbr.rel (%p2435_p8) target bundleno = 1535 (0x5ff), region = 52  ;;  %s2526_s2 = sand.u32 (!%p2435_p8), 1, %s2303_s28  }
  0x62   : > { %s1825_s12 = sshll.u32 (!%p2435_p8), %s2526_s2, 2  ;;  %s356_s22 = scalar_lea.sflag (!%p2435_p8), [#allocation5], %s2526_s2 }
  0x63   : > { %s2530_s23 = scalar_lea.vmem (!%p2435_p8), [#allocation4], %s1825_s12  ;;  %p2818_p1 = scmp.ne.s32.totalorder (!%p2435_p8), %s2805_s13, 0 }
  0x66   : > { %2278 = dma.done.wait (%p2818_p1), %s356_s22, 64  }
  0x67   : > { %2280 = vsyncadd (%p2818_p1), %s356_s22, 4294967232  ;;  %s364_s4 = sand.u32 1, %s2416_s11   ;;  %s368_s19 = scalar_lea.vmem [#allocation7], %s1825_s12 }
  0x68   : > { %s365_s15 = scalar_lea.sflag [#allocation8], %s364_s4 }
  0x69   : > { %2282 = dma.done.wait (%p2818_p1), %s365_s15, 64  }
  0x6a   : > { %2284 = vsyncadd (%p2818_p1), %s365_s15, 4294967232  ;;  %p2819_p8 = scmp.eq.s32.totalorder %s2416_s11, 0 }
  0x6c   : > { %2286 = dma.done.wait (%p2819_p8), [#allocation8], 256   ;;  %p2820_p7 = pmov %p2819_p8 }
  0x6e   : > { %2288 = vsyncadd (%p2820_p7), [#allocation8], 4294967040  ;;  %p2821_p6 = pmov %p2820_p7 }
  0x70   : > { %2290 = dma.done.wait (%p2821_p6), [#allocation11], 512   ;;  %p2822_p12 = pmov %p2821_p6 }
  0x71   : > { %v2328_v0 = vmov 0.0   ;;  %vm2329_vm0 = vmmov 0   ;;  %v2071_v1 = vld [vmem:[#allocation10 + $0x8] sm:$0xff]   ;;  %v2072_v2 = vld [vmem:[#allocation10] sm:$0xff]   ;;  %v2073_v3 = vld [vmem:[#allocation9 + $0x8] sm:$0xff]   ;;  %vm447_vm1 = vcmask 261120   ;;  %v506_v21 = vlaneseq }
  0x72   : > { %2292 = vsyncadd (%p2822_p12), [#allocation11], 4294966784  ;;  %1888 = vmatprep.subr.bf16.mxu0 %v2328_v0  ;;  %1896 = vmatprep.subr.bf16.mxu1 %v2328_v0  ;;  %v2074_v4 = vld [vmem:[#allocation9] sm:$0xff]   ;;  %v423_v5 = vld [vmem:[%s368_s19] sm:$0xf]  ;;  %s2330_s6 = smov 104  }
  0x73   : > { %1892 = vmatprep.mubr.msk.bf16.mxu0 %vm2329_vm0, %v2328_v0  ;;  %1900 = vmatprep.mubr.msk.bf16.mxu1 %vm2329_vm0, %v2328_v0  ;;  %v802_v6 = vld [vmem:[%s2530_s23] sm:$0xf]  ;;  %s2331_s14 = smov 120   ;;  %s2332_s16 = smov 112   ;;  %v2333_v19 = vmov 1983009808  }
  0x74   : > { %1889 = vmatpush3.bf16.msra.mxu0 %v2071_v1  ;;  %1897 = vmatpush3.bf16.msra.mxu1 %v2073_v3  ;;  %v1831_v7 = vld [vmem:[%s2793_s5] ss:$0 sm:$0xff]  ;;  %v504_v20 = vunpack.c.l.s4 %v2333_v19  ;;  %v2334_v22 = vmov 1934713408   ;;  %v507_v25 = vshrl.u32 %v506_v21, 7  ;;  %vm641_vm2 = vcmask 60416  }
  0x75   : > { %1890 = vmatprep.subr.bf16.mxu0 %v2328_v0  ;;  %1898 = vmatprep.subr.bf16.mxu1 %v2328_v0  ;;  %v1839_v9 = vld [vmem:[%s2791_s3] ss:$0 sm:$0xff]  ;;  %v536_v23 = vunpack.c.l.s4 %v2334_v22  ;;  %vm1024_vm3 = vcmask 64512   ;;  %s2335_s24 = smov 96   ;;  %vm1264_vm4 = vcmask 1043456   ;;  %s2336_s17 = smov 16  }
  0x76   : > { %v505_v24 = vunpack.c.0.s8 %v504_v20  ;;  %s2337_s26 = smov 8   ;;  %s2338_s0 = smov 24   ;;  %vm1595_vm5 = vcmask 130048   ;;  %vm1597_vm6 = vcmask 195584  }
  0x77   : > { %v537_v28 = vunpack.c.0.s8 %v536_v23  ;;  %s1830_s12 = sshll.u32 %s2526_s2, 3  ;;  %s1860_s4 = sshll.u32 %s2311_s30, 7 }
  0x78   : > { %1891 = vmatpush3.bf16.msra.mxu0 %v2072_v2  ;;  %1899 = vmatpush3.bf16.msra.mxu1 %v2074_v4  ;;  %v2581_v29 = vsub.s32 %v505_v24, %v507_v25  ;;  %s417_s15 = scalar_lea.vmem [#allocation13], %s1830_s12  ;;  %s2739_s20 = scalar_lea.hbm %s2796_s8, %s1860_s4 }
  0x79   : > { %1904 = vmatprep.subr.bf16.mxu0 %v2328_v0  ;;  %1910 = vmatprep.subr.bf16.mxu1 %v2328_v0  ;;  %v2593_v36 = vsub.s32 %v537_v28, %v507_v25  ;;  %s1682_s19 = sshll.u32 %s417_s15, 4  ;;  %s1668_s21 = scalar_lea.sflag [#allocation6], %s2526_s2  ;;  %s2741_s19 = int_to_ptr.vmem [resolvable:$true] %s1682_s19 }
  0x7a   : > { %s2227_s30 = scalar_lea.vmem %s2741_s19, 128 }
  0x7b   : > { %1893 = vmatmul.mubr.msk.bf16.vlgmr.msra.gmra.mxu0 %vm447_vm1, %v423_v5  ;;  %1901 = vmatmul.mubr.msk.bf16.vlgmr.msra.gmra.mxu1 %vm447_vm1, %v802_v6  ;;  %p2228_p0 = scmp.ne.s32.totalorder %s2741_s19, %s2227_s30 }
  0x7c   : > { %1906 = vmatprep.mubr.msk.bf16.mxu0 %vm2329_vm0, %v2328_v0  ;;  %1912 = vmatprep.mubr.msk.bf16.mxu1 %vm2329_vm0, %v2328_v0 }
  0x7d   : > { %p2229_p3 = pnand %p2228_p0, %p2481_p5 }
  0x7f   : > { %p2230_p10 = pneg %p2229_p3 }
 0x13b   : > { %v485_v8 = vpop.f32.mrf.mxu0  ;;  %v864_v12 = vpop.f32.mrf.mxu1 }
 0x13c   : > { %v2572_v10 = vadd.f32 %v1831_v7, %v485_v8  ;;  %v865_v13 = vadd.f32 %v1839_v9, %v864_v12 }
 0x13d   : > { %v1894_v11 = vpop.f32.mrf.mxu0  ;;  %v1902_v15 = vpop.f32.mrf.mxu1 }
 0x13e   : > { %498 = vrot.lane.b32.xlu1 %v2572_v10, %s2330_s6  ;;  %492 = vrot.lane.b32.xlu0 %v2572_v10, %s2331_s14 }
 0x13f   : > { %v488_v14 = vpop.f32.mrf.mxu0  ;;  %v867_v17 = vpop.f32.mrf.mxu1 }
 0x141   : > { %v1895_v16 = vpop.f32.mrf.mxu0  ;;  %v1903_v18 = vpop.f32.mrf.mxu1 }
 0x142   : > { %871 = vrot.lane.b32.xlu1 %v865_v13, %s2331_s14  ;;  %495 = vrot.lane.b32.xlu0 %v2572_v10, %s2332_s16 }
 0x146   : > { %877 = vrot.lane.b32.xlu1 %v865_v13, %s2330_s6  ;;  %874 = vrot.lane.b32.xlu0 %v865_v13, %s2332_s16  ;;  %s2339_s6 = smov [#allocation13]  }
 0x147   : > { %s2231_s14 = sshll.u32 %s2339_s6, 4  ;;  %s2232_s14 = int_to_ptr.vmem [resolvable:$false] %s2231_s14 }
 0x148   : > { %s2233_s16 = scalar_lea.vmem %s2232_s14, 256  ;;  %p2234_p11 = scmp.lt.s32.totalorder %s2741_s19, %s2232_s14 }
 0x149   : > { %p2235_p9 = scmp.lt.s32.totalorder %s2233_s16, %s2227_s30 }
 0x14b   : > { %p2236_p13 = por %p2235_p9, %p2234_p11 }
 0x14d   : > { %p2237_p2 = pnand %p2236_p13, %p2230_p10 }
 0x1b0   : > { %v2577_v26 = vpop.permute.xlu1 %498  ;;  %v2579_v27 = vpop.permute.xlu0 %492 }
 0x1b1   : > { %v517_v30 = vcombine.low %v2579_v27, %v2577_v26  ;;  %v518_v31 = vcombine.high %v2579_v27, %v2577_v26 }
 0x1b3   : > { %v525_v37 = vrot.slane %v517_v30, %v2581_v29  ;;  %v532_v38 = vrot.slane %v518_v31, %v2581_v29 }
 0x1b4   : > { %v872_v32 = vpop.permute.xlu1 %871  ;;  %v2587_v33 = vpop.permute.xlu0 %495 }
 0x1b5   : > { %v501_v34 = vcombine.low %v2572_v10, %v2587_v33  ;;  %v502_v35 = vcombine.high %v2572_v10, %v2587_v33 }
 0x1b7   : > { %v509_v39 = vrot.slane %v501_v34, %v2581_v29  ;;  %v516_v40 = vrot.slane %v502_v35, %v2581_v29 }
 0x1b8   : > { %v878_v41 = vpop.permute.xlu1 %877  ;;  %v875_v42 = vpop.permute.xlu0 %874 }
 0x1b9   : > { %v533_v43 = vcombine.low %v509_v39, %v525_v37  ;;  %v534_v44 = vcombine.high %v509_v39, %v525_v37  ;;  %v549_v45 = vcombine.low %v516_v40, %v532_v38  ;;  %v550_v46 = vcombine.high %v516_v40, %v532_v38 }
 0x1ba   : > { %v896_v47 = vcombine.low %v872_v32, %v878_v41  ;;  %v897_v48 = vcombine.high %v872_v32, %v878_v41  ;;  %v880_v49 = vcombine.low %v865_v13, %v875_v42  ;;  %v881_v50 = vcombine.high %v865_v13, %v875_v42 }
 0x1bb   : > { %v541_v51 = vrot.slane %v533_v43, %v2593_v36  ;;  %v548_v52 = vrot.slane %v534_v44, %v2593_v36  ;;  %v557_v53 = vrot.slane %v549_v45, %v2593_v36  ;;  %v564_v54 = vrot.slane %v550_v46, %v2593_v36 }
 0x1bc   : > { %v904_v55 = vrot.slane %v896_v47, %v2581_v29  ;;  %v911_v56 = vrot.slane %v897_v48, %v2581_v29  ;;  %v888_v57 = vrot.slane %v880_v49, %v2581_v29  ;;  %v895_v58 = vrot.slane %v881_v50, %v2581_v29 }
 0x1bd   : > { %v569_v59 = vcombine.low %v541_v51, %v548_v52  ;;  %v1835_v60 = vcombine.high %v541_v51, %v548_v52  ;;  %v585_v61 = vcombine.low %v557_v53, %v564_v54  ;;  %v1836_v62 = vcombine.high %v557_v53, %v564_v54 }
 0x1be   : > { %v912_v63 = vcombine.low %v888_v57, %v904_v55  ;;  %v913_v1 = vcombine.high %v888_v57, %v904_v55  ;;  %v928_v2 = vcombine.low %v895_v58, %v911_v56  ;;  %v929_v3 = vcombine.high %v895_v58, %v911_v56 }
 0x1bf   : > { %v576_v4 = vrot.slane %v569_v59, %v2581_v29  ;;  %v584_v5 = vrot.slane %v1835_v60, %v2581_v29  ;;  %v592_v6 = vrot.slane %v585_v61, %v2581_v29  ;;  %v600_v7 = vrot.slane %v1836_v62, %v2581_v29 }
 0x1c0   : > { %v920_v8 = vrot.slane %v912_v63, %v2593_v36  ;;  %v927_v9 = vrot.slane %v913_v1, %v2593_v36  ;;  %v936_v11 = vrot.slane %v928_v2, %v2593_v36  ;;  %v943_v12 = vrot.slane %v929_v3, %v2593_v36 }
 0x1c1   : > { %v601_v13 = vcombine.low %v576_v4, %v584_v5  ;;  %v602_v14 = vcombine.high %v576_v4, %v584_v5  ;;  %v617_v15 = vcombine.low %v592_v6, %v600_v7  ;;  %v618_v16 = vcombine.high %v592_v6, %v600_v7 }
 0x1c2   : > { %v948_v17 = vcombine.low %v920_v8, %v927_v9  ;;  %v1843_v18 = vcombine.high %v920_v8, %v927_v9  ;;  %v964_v19 = vcombine.low %v936_v11, %v943_v12  ;;  %v1844_v20 = vcombine.high %v936_v11, %v943_v12 }
 0x1c3   : > { %v609_v21 = vrot.slane %v601_v13, %v2593_v36  ;;  %v616_v22 = vrot.slane %v602_v14, %v2593_v36  ;;  %v625_v23 = vrot.slane %v617_v15, %v2593_v36  ;;  %v632_v24 = vrot.slane %v618_v16, %v2593_v36 }
 0x1c4   : > { %v955_v32 = vrot.slane %v948_v17, %v2581_v29  ;;  %v963_v34 = vrot.slane %v1843_v18, %v2581_v29  ;;  %v971_v35 = vrot.slane %v964_v19, %v2581_v29  ;;  %v979_v37 = vrot.slane %v1844_v20, %v2581_v29 }
 0x1c5   : > { %v633_v25 = vcombine.low %v609_v21, %v625_v23  ;;  %v634_v28 = vcombine.high %v609_v21, %v625_v23  ;;  %v635_v30 = vcombine.low %v616_v22, %v632_v24  ;;  %v636_v31 = vcombine.high %v616_v22, %v632_v24 }
 0x1c6   : > { %v980_v42 = vcombine.low %v955_v32, %v963_v34  ;;  %v996_v43 = vcombine.low %v971_v35, %v979_v37  ;;  %v981_v50 = vcombine.high %v955_v32, %v963_v34  ;;  %v997_v51 = vcombine.high %v971_v35, %v979_v37 }
 0x1c7   : > { %v637_v38 = vpack.c.bf16 %v633_v25, %v633_v25  ;;  %v638_v39 = vpack.c.bf16 %v634_v28, %v634_v28  ;;  %v639_v40 = vpack.c.bf16 %v635_v30, %v635_v30  ;;  %v640_v41 = vpack.c.bf16 %v636_v31, %v636_v31 }
 0x1c8   : > { %v988_v44 = vrot.slane %v980_v42, %v2593_v36  ;;  %v1004_v45 = vrot.slane %v996_v43, %v2593_v36  ;;  %v995_v58 = vrot.slane %v981_v50, %v2593_v36  ;;  %v1011_v59 = vrot.slane %v997_v51, %v2593_v36 }
 0x1c9   : > { %642 = vst.msk [vmem:[#allocation2] sm:$0xf] %vm641_vm2, %v637_v38  ;;  %643 = vst.msk [vmem:[#allocation2 + $0x4] sm:$0xf] %vm641_vm2, %v638_v39 }
 0x1ca   : > { %644 = vst.msk [vmem:[#allocation2 + $0x8] sm:$0xf] %vm641_vm2, %v639_v40  ;;  %645 = vst.msk [vmem:[#allocation2 + $0xc] sm:$0xf] %vm641_vm2, %v640_v41  ;;  %v1012_v52 = vcombine.low %v988_v44, %v1004_v45  ;;  %v1013_v53 = vcombine.high %v988_v44, %v1004_v45  ;;  %v1014_v62 = vcombine.low %v995_v58, %v1011_v59 }
 0x1cb   : > { %v1015_v63 = vcombine.high %v995_v58, %v1011_v59 }
 0x1cc   : > { %v1016_v56 = vpack.c.bf16 %v1012_v52, %v1012_v52  ;;  %v1017_v57 = vpack.c.bf16 %v1013_v53, %v1013_v53  ;;  %v1018_v1 = vpack.c.bf16 %v1014_v62, %v1014_v62 }
 0x1cd   : > { %v1019_v2 = vpack.c.bf16 %v1015_v63, %v1015_v63 }
 0x1d0   : > { %v1020_v46 = vld [vmem:[#allocation2] sm:$0xf]  ;;  %v1021_v47 = vld [vmem:[#allocation2 + $0x4] sm:$0xf] }
 0x1d1   : > { %v1029_v48 = vsel %vm1024_vm3, %v1020_v46, 0  ;;  %v1075_v49 = vsel %vm1024_vm3, %v1021_v47, 0  ;;  %v1022_v54 = vld [vmem:[#allocation2 + $0x8] sm:$0xf]  ;;  %v1023_v55 = vld [vmem:[#allocation2 + $0xc] sm:$0xf] }
 0x1d2   : > { %1905 = vmatpush3.bf16.xpose.msra.mxu0 %v1029_v48  ;;  %1911 = vmatpush3.bf16.xpose.msra.mxu1 %v1075_v49  ;;  %v1121_v60 = vsel %vm1024_vm3, %v1022_v54, 0  ;;  %v1167_v61 = vsel %vm1024_vm3, %v1023_v55, 0 }
 0x1d3   : > { %1916 = vmatprep.subr.bf16.mxu0 %v2328_v0  ;;  %1922 = vmatprep.subr.bf16.mxu1 %v2328_v0 }
 0x1d9   : > { %1907 = vmatmul.mubr.msk.bf16.vlgmr.msra.gmra.mxu0 %vm1024_vm3, %v1016_v56  ;;  %1913 = vmatmul.mubr.msk.bf16.vlgmr.msra.gmra.mxu1 %vm1024_vm3, %v1017_v57 }
 0x1da   : > { %1917 = vmatpush3.bf16.xpose.msra.mxu0 %v1121_v60  ;;  %1923 = vmatpush3.bf16.xpose.msra.mxu1 %v1167_v61 }
 0x1db   : > { %1918 = vmatprep.mubr.msk.bf16.mxu0 %vm2329_vm0, %v2328_v0  ;;  %1924 = vmatprep.mubr.msk.bf16.mxu1 %vm2329_vm0, %v2328_v0 }
 0x1dc   : > { %1928 = vmatprep.subr.bf16.mxu0 %v2328_v0  ;;  %1934 = vmatprep.subr.bf16.mxu1 %v2328_v0 }
 0x1e1   : > { %1919 = vmatmul.mubr.msk.bf16.vlgmr.msra.gmra.mxu0 %vm1024_vm3, %v1018_v1  ;;  %1925 = vmatmul.mubr.msk.bf16.vlgmr.msra.gmra.mxu1 %vm1024_vm3, %v1019_v2 }
 0x1e2   : > { %1930 = vmatprep.mubr.msk.bf16.mxu0 %vm2329_vm0, %v2328_v0  ;;  %1936 = vmatprep.mubr.msk.bf16.mxu1 %vm2329_vm0, %v2328_v0 }
 0x299   : > { %v1065_v3 = vpop.f32.mrf.mxu0  ;;  %v1111_v4 = vpop.f32.mrf.mxu1 }
 0x29a   : > { %v1212_v5 = vsel %vm1024_vm3, %v1111_v4, -inf  ;;  %v1209_v6 = vsel %vm1024_vm3, %v1065_v3, -inf }
 0x29b   : > { %1213 = vmax.xlane.f32.xlu1 %v1212_v5  ;;  %v1914_v7 = vpop.f32.mrf.mxu1  ;;  %1210 = vmax.xlane.f32.xlu0 %v1209_v6  ;;  %v1908_v8 = vpop.f32.mrf.mxu0 }
 0x29d   : > { %v1068_v9 = vpop.f32.mrf.mxu0  ;;  %v1114_v11 = vpop.f32.mrf.mxu1 }
 0x29f   : > { %v1909_v12 = vpop.f32.mrf.mxu0  ;;  %v1915_v13 = vpop.f32.mrf.mxu1 }
 0x2a1   : > { %v1157_v14 = vpop.f32.mrf.mxu0  ;;  %v1203_v15 = vpop.f32.mrf.mxu1 }
 0x2a2   : > { %v1215_v16 = vsel %vm1024_vm3, %v1157_v14, -inf  ;;  %v1218_v21 = vsel %vm1024_vm3, %v1203_v15, -inf }
 0x2a3   : > { %v1926_v17 = vpop.f32.mrf.mxu1  ;;  %1216 = vmax.xlane.f32.xlu0 %v1215_v16  ;;  %v1920_v18 = vpop.f32.mrf.mxu0 }
 0x2a5   : > { %v1160_v19 = vpop.f32.mrf.mxu0  ;;  %v1206_v20 = vpop.f32.mrf.mxu1 }
 0x2a7   : > { %v1927_v22 = vpop.f32.mrf.mxu1  ;;  %1219 = vmax.xlane.f32.xlu0 %v1218_v21  ;;  %v1921_v23 = vpop.f32.mrf.mxu0 }
 0x2ac   : > { %646 = vrot.lane.b32.xlu1 %v2572_v10, %s2335_s24 }
 0x2b0   : > { %650 = vrot.lane.b32.xlu1 %v2587_v33, %s2335_s24 }
 0x2b4   : > { %652 = vrot.lane.b32.xlu1 %v2577_v26, %s2335_s24 }
 0x2bd   : > { %648 = vrot.lane.b32.xlu0 %v2579_v27, %s2335_s24 }
 0x324   : > { %v1214_v24 = vpop.xlane.xlu1 %1213  ;;  %v1211_v25 = vpop.xlane.xlu0 %1210 }
 0x325   : > { %v1222_v28 = vsub.f32 %v1111_v4, %v1214_v24  ;;  %v1221_v30 = vsub.f32 %v1065_v3, %v1211_v25 }
 0x327   : > { %v1227_v31 = vmul.f32 1.442695, %v1222_v28  ;;  %v1225_v32 = vmul.f32 1.442695, %v1221_v30 }
 0x328   : > { %v647_v34 = vpop.permute.xlu1 %646 }
 0x329   : > { %2077 = vpow2.f32 %v1227_v31 }
 0x32a   : > { %2079 = vpow2.f32 %v1225_v32 }
 0x32c   : > { %v1217_v35 = vpop.xlane.xlu0 %1216  ;;  %v651_v38 = vpop.permute.xlu1 %650 }
 0x32d   : > { %v1223_v37 = vsub.f32 %v1157_v14, %v1217_v35  ;;  %v658_v40 = vcombine.low %v647_v34, %v651_v38  ;;  %v659_v26 = vcombine.high %v647_v34, %v651_v38 }
 0x32f   : > { %v1229_v39 = vmul.f32 1.442695, %v1223_v37  ;;  %v666_v46 = vrot.slane %v658_v40, %v2581_v29  ;;  %v673_v48 = vrot.slane %v659_v26, %v2581_v29 }
 0x330   : > { %v1220_v10 = vpop.xlane.xlu0 %1219  ;;  %v653_v27 = vpop.permute.xlu1 %652 }
 0x331   : > { %2081 = vpow2.f32 %v1229_v39  ;;  %v1224_v33 = vsub.f32 %v1203_v15, %v1220_v10 }
 0x333   : > { %v1231_v41 = vmul.f32 1.442695, %v1224_v33 }
 0x334   : > { %v649_v42 = vpop.permute.xlu0 %648 }
 0x335   : > { %2083 = vpow2.f32 %v1231_v41  ;;  %v674_v43 = vcombine.low %v649_v42, %v653_v27  ;;  %v675_v44 = vcombine.high %v649_v42, %v653_v27 }
 0x336   : > { %v2659_v45 = vpop.eup %2077 }
 0x337   : > { %v2662_v47 = vpop.eup %2079  ;;  %v682_v49 = vrot.slane %v674_v43, %v2581_v29  ;;  %v689_v50 = vrot.slane %v675_v44, %v2581_v29  ;;  %v1236_v51 = vsel %vm1024_vm3, %v2659_v45, 0.0 }
 0x338   : > { %1237 = vadd.xlane.f32.xlu1 %v1236_v51  ;;  %v1233_v52 = vsel %vm1024_vm3, %v2662_v47, 0.0 }
 0x339   : > { %v690_v53 = vcombine.low %v666_v46, %v682_v49  ;;  %v691_v54 = vcombine.high %v666_v46, %v682_v49  ;;  %v706_v55 = vcombine.low %v673_v48, %v689_v50  ;;  %v707_v56 = vcombine.high %v673_v48, %v689_v50  ;;  %1234 = vadd.xlane.f32.xlu0 %v1233_v52 }
 0x33b   : > { %v698_v57 = vrot.slane %v690_v53, %v2593_v36  ;;  %v705_v58 = vrot.slane %v691_v54, %v2593_v36  ;;  %v714_v59 = vrot.slane %v706_v55, %v2593_v36  ;;  %v721_v60 = vrot.slane %v707_v56, %v2593_v36 }
 0x33d   : > { %v726_v61 = vcombine.low %v698_v57, %v705_v58  ;;  %v1837_v62 = vcombine.high %v698_v57, %v705_v58  ;;  %v742_v63 = vcombine.low %v714_v59, %v721_v60  ;;  %v1838_v1 = vcombine.high %v714_v59, %v721_v60 }
 0x33e   : > { %v2675_v2 = vpop.eup %2081 }
 0x33f   : > { %v733_v3 = vrot.slane %v726_v61, %v2581_v29  ;;  %v741_v4 = vrot.slane %v1837_v62, %v2581_v29  ;;  %v749_v5 = vrot.slane %v742_v63, %v2581_v29  ;;  %v757_v6 = vrot.slane %v1838_v1, %v2581_v29 }
 0x340   : > { %v1239_v7 = vsel %vm1024_vm3, %v2675_v2, 0.0 }
 0x341   : > { %v758_v8 = vcombine.low %v733_v3, %v741_v4  ;;  %v759_v9 = vcombine.high %v733_v3, %v741_v4  ;;  %v774_v11 = vcombine.low %v749_v5, %v757_v6  ;;  %v775_v12 = vcombine.high %v749_v5, %v757_v6  ;;  %1240 = vadd.xlane.f32.xlu0 %v1239_v7 }
 0x342   : > { %v2084_v13 = vpop.eup %2083 }
 0x343   : > { %v766_v14 = vrot.slane %v758_v8, %v2593_v36  ;;  %v773_v15 = vrot.slane %v759_v9, %v2593_v36  ;;  %v782_v16 = vrot.slane %v774_v11, %v2593_v36  ;;  %v789_v17 = vrot.slane %v775_v12, %v2593_v36 }
 0x344   : > { %v1242_v18 = vsel %vm1024_vm3, %v2084_v13, 0.0 }
 0x345   : > { %v790_v19 = vcombine.low %v766_v14, %v782_v16  ;;  %v791_v20 = vcombine.high %v766_v14, %v782_v16  ;;  %v792_v21 = vcombine.low %v773_v15, %v789_v17  ;;  %v793_v22 = vcombine.high %v773_v15, %v789_v17  ;;  %1243 = vadd.xlane.f32.xlu0 %v1242_v18  ;;  %v2075_v17 = vld [vmem:[#allocation12 + $0x8] sm:$0xff]  }
 0x347   : > { %v794_v23 = vpack.c.bf16 %v790_v19, %v790_v19  ;;  %v795_v24 = vpack.c.bf16 %v791_v20, %v791_v20  ;;  %v796_v25 = vpack.c.bf16 %v792_v21, %v792_v21  ;;  %v797_v28 = vpack.c.bf16 %v793_v22, %v793_v22 }
 0x349   : > { %798 = vst.msk [vmem:[#allocation3] sm:$0xf] %vm641_vm2, %v794_v23  ;;  %799 = vst.msk [vmem:[#allocation3 + $0x4] sm:$0xf] %vm641_vm2, %v795_v24 }
 0x34a   : > { %800 = vst.msk [vmem:[#allocation3 + $0x8] sm:$0xf] %vm641_vm2, %v796_v25  ;;  %801 = vst.msk [vmem:[#allocation3 + $0xc] sm:$0xf] %vm641_vm2, %v797_v28 }
 0x350   : > { %v1257_v30 = vld [vmem:[#allocation3] sm:$0xf]  ;;  %v1258_v31 = vld [vmem:[#allocation3 + $0x4] sm:$0xf] }
 0x351   : > { %v1266_v32 = vsel %vm1264_vm4, %v1257_v30, 0  ;;  %v1312_v34 = vsel %vm1264_vm4, %v1258_v31, 0  ;;  %v1260_v41 = vld [vmem:[#allocation3 + $0xc] sm:$0xf]  ;;  %v1259_v42 = vld [vmem:[#allocation3 + $0x8] sm:$0xf] }
 0x352   : > { %1929 = vmatpush3.bf16.msra.mxu0 %v1266_v32  ;;  %1935 = vmatpush3.bf16.msra.mxu1 %v1312_v34  ;;  %v1404_v44 = vsel %vm1264_vm4, %v1260_v41, 0  ;;  %v1358_v46 = vsel %vm1264_vm4, %v1259_v42, 0  ;;  %v2076_v30 = vld [vmem:[#allocation12] sm:$0xff]  }
 0x353   : > { %1940 = vmatprep.subr.bf16.mxu0 %v2328_v0  ;;  %1946 = vmatprep.subr.bf16.mxu1 %v2328_v0 }
 0x3c1   : > { %v1238_v35 = vpop.xlane.xlu1 %1237 }
 0x3c2   : > { %2085 = vrcp.f32 %v1238_v35  ;;  %v1235_v37 = vpop.xlane.xlu0 %1234 }
 0x3c3   : > { %2087 = vrcp.f32 %v1235_v37 }
 0x3ca   : > { %v1241_v38 = vpop.xlane.xlu0 %1240 }
 0x3cb   : > { %2089 = vrcp.f32 %v1241_v38 }
 0x3ce   : > { %v1244_v39 = vpop.xlane.xlu0 %1243 }
 0x3cf   : > { %v2086_v10 = vpop.eup %2085  ;;  %2091 = vrcp.f32 %v1244_v39 }
 0x3d0   : > { %v2088_v33 = vpop.eup %2087  ;;  %v1250_v40 = vmul.f32 %v2086_v10, %v2659_v45 }
 0x3d1   : > { %v1249_v26 = vmul.f32 %v2088_v33, %v2662_v47 }
 0x3d2   : > { %v1254_v27 = vpack.c.bf16 %v1250_v40, %v1250_v40 }
 0x3d3   : > { %v1253_v43 = vpack.c.bf16 %v1249_v26, %v1249_v26 }
 0x3d4   : > { %1937 = vmatmul.mubr.msk.bf16.vlgmr.msra.gmra.mxu1 %vm1024_vm3, %v1254_v27 }
 0x3d5   : > { %1931 = vmatmul.mubr.msk.bf16.vlgmr.msra.gmra.mxu0 %vm1024_vm3, %v1253_v43  ;;  %1947 = vmatpush3.bf16.msra.mxu1 %v1404_v44 }
 0x3d6   : > { %1941 = vmatpush3.bf16.msra.mxu0 %v1358_v46  ;;  %1942 = vmatprep.mubr.msk.bf16.mxu0 %vm2329_vm0, %v2328_v0 }
 0x3d7   : > { %1948 = vmatprep.mubr.msk.bf16.mxu1 %vm2329_vm0, %v2328_v0  ;;  %1952 = vmatprep.subr.bf16.mxu0 %v2328_v0 }
 0x3d8   : > { %v2090_v45 = vpop.eup %2089 }
 0x3d9   : > { %v1251_v47 = vmul.f32 %v2090_v45, %v2675_v2 }
 0x3db   : > { %v1255_v48 = vpack.c.bf16 %v1251_v47, %v1251_v47 }
 0x3dc   : > { %v2092_v49 = vpop.eup %2091 }
 0x3dd   : > { %1943 = vmatmul.mubr.msk.bf16.vlgmr.msra.gmra.mxu0 %vm1024_vm3, %v1255_v48  ;;  %v1252_v50 = vmul.f32 %v2092_v49, %v2084_v13  ;;  %v1855_v49 = vld [vmem:[%s2795_s7] ss:$0 sm:$0xff] }
 0x3de   : > { %1956 = vmatprep.mubr.msk.bf16.mxu0 %vm2329_vm0, %v2328_v0  ;;  %1953 = vmatpush3.bf16.msra.mxu0 %v2075_v17 }
 0x3df   : > { %v1256_v51 = vpack.c.bf16 %v1252_v50, %v1252_v50  ;;  %1954 = vmatprep.subr.bf16.mxu0 %v2328_v0 }
 0x3e1   : > { %1949 = vmatmul.mubr.msk.bf16.vlgmr.msra.gmra.mxu1 %vm1024_vm3, %v1256_v51 }
 0x3e2   : > { %1955 = vmatpush3.bf16.msra.mxu0 %v2076_v30 }
 0x494   : > { %v1348_v52 = vpop.f32.mrf.mxu1 }
 0x495   : > { %v1302_v53 = vpop.f32.mrf.mxu0 }
 0x496   : > { %v1938_v54 = vpop.f32.mrf.mxu1 }
 0x497   : > { %v1932_v55 = vpop.f32.mrf.mxu0 }
 0x498   : > { %v1351_v56 = vpop.f32.mrf.mxu1 }
 0x499   : > { %v1305_v57 = vpop.f32.mrf.mxu0 }
 0x49a   : > { %v1939_v58 = vpop.f32.mrf.mxu1 }
 0x49b   : > { %v1933_v59 = vpop.f32.mrf.mxu0 }
 0x49d   : > { %v1394_v60 = vpop.f32.mrf.mxu0 }
 0x49e   : > { %v1446_v62 = vcombine.low %v1302_v53, %v1394_v60  ;;  %v1447_v63 = vcombine.high %v1302_v53, %v1394_v60 }
 0x49f   : > { %v1944_v61 = vpop.f32.mrf.mxu0 }
 0x4a0   : > { %v1454_v7 = vrot.slane %v1446_v62, %v2581_v29  ;;  %v1461_v8 = vrot.slane %v1447_v63, %v2581_v29 }
 0x4a1   : > { %v1397_v1 = vpop.f32.mrf.mxu0  ;;  %v1440_v2 = vpop.f32.mrf.mxu1 }
 0x4a2   : > { %v1462_v3 = vcombine.low %v1348_v52, %v1440_v2  ;;  %v1463_v4 = vcombine.high %v1348_v52, %v1440_v2 }
 0x4a3   : > { %v1945_v5 = vpop.f32.mrf.mxu0  ;;  %v1950_v6 = vpop.f32.mrf.mxu1 }
 0x4a4   : > { %v1470_v9 = vrot.slane %v1462_v3, %v2581_v29  ;;  %v1477_v11 = vrot.slane %v1463_v4, %v2581_v29 }
 0x4a5   : > { %v1443_v12 = vpop.f32.mrf.mxu1 }
 0x4a6   : > { %v1478_v13 = vcombine.low %v1454_v7, %v1470_v9  ;;  %v1479_v14 = vcombine.high %v1454_v7, %v1470_v9  ;;  %v1494_v15 = vcombine.low %v1461_v8, %v1477_v11  ;;  %v1495_v16 = vcombine.high %v1461_v8, %v1477_v11 }
 0x4a7   : > { %v1951_v18 = vpop.f32.mrf.mxu1 }
 0x4a8   : > { %v1486_v19 = vrot.slane %v1478_v13, %v2593_v36  ;;  %v1493_v20 = vrot.slane %v1479_v14, %v2593_v36  ;;  %v1502_v21 = vrot.slane %v1494_v15, %v2593_v36  ;;  %v1509_v22 = vrot.slane %v1495_v16, %v2593_v36 }
 0x4aa   : > { %v1514_v23 = vcombine.low %v1486_v19, %v1493_v20  ;;  %v1853_v24 = vcombine.high %v1486_v19, %v1493_v20  ;;  %v1530_v25 = vcombine.low %v1502_v21, %v1509_v22  ;;  %v1854_v28 = vcombine.high %v1502_v21, %v1509_v22 }
 0x4ac   : > { %v1521_v31 = vrot.slane %v1514_v23, %v2581_v29  ;;  %v1529_v32 = vrot.slane %v1853_v24, %v2581_v29  ;;  %v1537_v34 = vrot.slane %v1530_v25, %v2581_v29  ;;  %v1545_v35 = vrot.slane %v1854_v28, %v2581_v29 }
 0x4ae   : > { %v1547_v37 = vcombine.high %v1521_v31, %v1529_v32  ;;  %v1563_v38 = vcombine.high %v1537_v34, %v1545_v35  ;;  %v1546_v39 = vcombine.low %v1521_v31, %v1529_v32  ;;  %v1562_v10 = vcombine.low %v1537_v34, %v1545_v35 }
 0x4b0   : > { %v1561_v0 = vrot.slane %v1547_v37, %v2593_v36  ;;  %v1577_v33 = vrot.slane %v1563_v38, %v2593_v36  ;;  %v1554_v40 = vrot.slane %v1546_v39, %v2593_v36  ;;  %v1570_v26 = vrot.slane %v1562_v10, %v2593_v36 }
 0x4b2   : > { %v1580_v41 = vcombine.low %v1561_v0, %v1577_v33  ;;  %v1579_v27 = vcombine.high %v1554_v40, %v1570_v26  ;;  %v1578_v42 = vcombine.low %v1554_v40, %v1570_v26  ;;  %v1581_v29 = vcombine.high %v1561_v0, %v1577_v33 }
 0x4b4   : > { %1587 = vrot.lane.b32.xlu0 %v1580_v41, %s2336_s17  ;;  %1583 = vrot.lane.b32.xlu1 %v1579_v27, %s2337_s26 }
 0x4b8   : > { %1591 = vrot.lane.b32.xlu1 %v1581_v29, %s2338_s0 }
 0x526   : > { %v1584_v43 = vpop.permute.xlu1 %1583  ;;  %v1588_v44 = vpop.permute.xlu0 %1587 }
 0x527   : > { %v1594_v46 = vsel %vm1024_vm3, %v1578_v42, %v1584_v43 }
 0x528   : > { %v1596_v36 = vsel %vm1595_vm5, %v1594_v46, %v1588_v44 }
 0x52a   : > { %v1592_v45 = vpop.permute.xlu1 %1591 }
 0x52b   : > { %v1598_v47 = vsel %vm1597_vm6, %v1596_v36, %v1592_v45 }
 0x52c   : > { %v1599_v48 = vpack.c.bf16 %v1598_v47, %v1598_v47 }
 0x52e   : > { %1957 = vmatmul.mubr.msk.bf16.vlgmr.msra.gmra.mxu0 %vm447_vm1, %v1599_v48 }
 0x5ee   : > { %v1660_v50 = vpop.f32.mrf.mxu0 }
 0x5ef   : > { %v1661_v51 = vadd.f32 %v1855_v49, %v1660_v50 }
 0x5f0   : > { %v1958_v52 = vpop.f32.mrf.mxu0 }
 0x5f1   : > { %1666 = vst.msk [vmem:[%s417_s15] sm:$0xff] %vm447_vm1, %v1661_v51 }
 0x5f2   : > { %v1663_v53 = vpop.f32.mrf.mxu0 }
 0x5f3   : > { %2240 = shalt.err (!%p2237_p2)
}
 0x5f4   : > { %s2241_s24 = scalar_lea.hbm %s2739_s20, 128  ;;  %s2245_s26 = scalar_lea.hbm %s2796_s8, 256 }
 0x5f5   : > { %p2242_p4 = scmp.ne.s32.totalorder %s2739_s20, %s2241_s24  ;;  %p2246_p7 = scmp.lt.s32.totalorder %s2739_s20, %s2796_s8 }
 0x5f6   : > { %p2247_p6 = scmp.lt.s32.totalorder %s2245_s26, %s2241_s24 }
 0x5f7   : > { %p2243_p1 = pnand %p2242_p4, %p2481_p5 }
 0x5f8   : > { %p2248_p12 = por %p2247_p6, %p2246_p7 }
 0x5f9   : > { %p2244_p8 = pneg %p2243_p1 }
 0x5fb   : > { %p2249_p0 = pnand %p2248_p12, %p2244_p8 }
 0x5fd   : > { %2252 = shalt.err (!%p2249_p0)
}
 0x5fe   : > { %1976 = dma.vmem_to_hbm [thread:$0]  (%p2481_p5), %s2741_s19, 128, %s2739_s20, %s1668_s21   ;;  %v1959_v54 = vpop.f32.mrf.mxu0 }
 0x5ff PF: > { %s2823_s22 = sld [smem:[#allocation19_spill]]  ;;  %s1694_s23 = sand.u32 1, %s2299_s27  }
 0x600   : > { %p2825_p10 = scmp.ge.s32.totalorder %s2319_s10, 2  ;;  %s1695_s4 = scalar_lea.sflag [#allocation6], %s1694_s23 }
 0x605   : > { %p2824_p3 = scmp.ne.s32.totalorder %s2823_s22, 0 }
 0x607   : > { %p1996_p11 = pnand %p2825_p10, %p2824_p3 }
 0x609   : > { %p1997_p9 = pneg %p1996_p11 }
 0x60b   : > { %2294 = dma.done.wait (%p1997_p9), %s1695_s4, 128  }
 0x60c   : > { %2296 = vsyncadd (%p1997_p9), %s1695_s4, 4294967168  ;;  %s28_s10 = sadd.s32 1, %s2319_s10   ;;  %s2826_s18 = sld [smem:[#allocation20_spill]] }
 0x60d   : > { %p25_p13 = scmp.ge.s32.totalorder %s28_s10, 4   ;;  %s2827_s27 = smov %s2303_s28 }
 0x60e   : > { %s2828_s28 = smov %s2307_s29  ;;  %s2829_s29 = smov %s2493_s25 }
 0x60f   : > { %s2830_s30 = smov %s2315_s9  ;;  %27 = sbr.rel (!%p25_p13) target bundleno = 14 (0xe), region = 126 }
 0x612   : > { %s2831_s9 = smov %s2826_s18 }
 0x614   :  { %1700 = vsyncpa [#allocation5], 1 }
 0x615   :  { %1702 = vsyncpa [#allocation5 + $0x1], 1 }
 0x616   :  { %1703 = vsyncpa [#allocation8], 1 }
 0x617   :  { %1705 = vsyncpa [#allocation8 + $0x1], 1 }
 0x618   :  { %1706 = vsyncpa [#allocation11], 1 }
 0x619   :  { %1707 = vsyncpa [#allocation6], 1 }
 0x61a   :  { %1709 = vsyncpa [#allocation6 + $0x1], 1 }

// kernel: tpu_custom_call.1
= control target key start
LH: loop header
LB: loop body
LE: loop exit
PB: predicated region body
PF: predicated region fallthrough
CT: control target
= control target key end

     0   :  { %s2788_s0 = inlined_call_operand.hbm [shape: bf16[2,8,32], index: 0, kind: input, shape index: {}]   ;;  %s2789_s1 = inlined_call_operand.hbm [shape: bf16[2,8,32], index: 1, kind: input, shape index: {}]   ;;  %s2790_s2 = inlined_call_operand.hbm [shape: bf16[32,32], index: 2, kind: input, shape index: {}]   ;;  %s2791_s3 = inlined_call_operand.vmem [shape: f32[1,32], index: 3, kind: input, shape index: {}]   ;;  %s2792_s4 = inlined_call_operand.hbm [shape: bf16[32,64], index: 4, kind: input, shape index: {}]   ;;  %s2793_s5 = inlined_call_operand.vmem [shape: f32[1,64], index: 5, kind: input, shape index: {}]   ;;  %s2794_s6 = inlined_call_operand.hbm [shape: bf16[32,32], index: 6, kind: input, shape index: {}]   ;;  %s2795_s7 = inlined_call_operand.vmem [shape: f32[1,32], index: 7, kind: input, shape index: {}]   ;;  %s2796_s8 = inlined_call_operand.hbm [shape: f32[2,8,32], index: 8, kind: output, shape index: {}]  }
   0x1   :  { %2801 = sst [smem:[#allocation21_spill]] %s2788_s0 }
   0x2   :  { %2802 = sst [smem:[#allocation22_spill]] %s2790_s2 }
   0x3   :  { %2803 = sst [smem:[#allocation23_spill]] %s2792_s4 }
   0x4   :  { %2804 = sst [smem:[#allocation24_spill]] %s2794_s6 }
   0x5   :  { %13 = vsyncpa [#allocation5], 0 }
   0x6   :  { %15 = vsyncpa [#allocation5 + $0x1], 0 }
   0x7   :  { %16 = vsyncpa [#allocation8], 0 }
   0x8   :  { %18 = vsyncpa [#allocation8 + $0x1], 0 }
   0x9   :  { %19 = vsyncpa [#allocation11], 0 }
   0xa   :  { %20 = vsyncpa [#allocation6], 0 }
   0xb   :  { %22 = vsyncpa [#allocation6 + $0x1], 0  ;;  %s2385_s27 = smov 0   ;;  %s2387_s28 = smov 0  }
   0xc   :  { %s2389_s29 = smov 0   ;;  %s2391_s30 = smov 0  }
   0xd   :  { %s2393_s9 = smov 0   ;;  %s2395_s10 = smov 0  }
   0xe LB: > { %s2416_s11 = sadd.s32 4294967295, %s2319_s10   ;;  %s1814_s12 = sadd.s32 4294967294, %s2319_s10   ;;  %s2319_s10 = sphi %s2395_s10, %s28_s10   ;;  %s2315_s9 = sphi %s2393_s9, %s2831_s9   ;;  %s2311_s30 = sphi %s2391_s30, %s2830_s30   ;;  %s2307_s29 = sphi %s2389_s29, %s2829_s29   ;;  %s2303_s28 = sphi %s2387_s28, %s2828_s28   ;;  %s2299_s27 = sphi %s2385_s27, %s2827_s27  }
   0xf   : > { %p62_p0 = scmp.ne.s32.totalorder %s2303_s28, %s2299_s27  ;;  %p2797_p1 = scmp.eq.s32.totalorder %s2416_s11, 0 }
  0x10   : > { %p246_p3 = scmp.eq.s32.totalorder %s1814_s12, 1  ;;  %p1815_p5 = scmp.ge.s32.totalorder %s2319_s10, 1 }
  0x11   : > { %p2425_p4 = por %p2797_p1, %p62_p0  ;;  %p253_p7 = scmp.lt.s32.totalorder %s2319_s10, 3 }
  0x12   : > { %p2430_p6 = por %p246_p3, %p62_p0  ;;  %s2321_s16 = smov [#allocation9]  }
  0x13   : > { %s2805_s13 = scalar_select %p2425_p4, 1, 0 }
  0x14   : > { %s2806_s14 = scalar_select %p2430_p6, 1, 0 }
  0x15   : > { %p2435_p8 = pnand %p1815_p5, %p253_p7  ;;  %s265_s17 = sshll.u32 %s2321_s16, 4  ;;  %s266_s17 = int_to_ptr.vmem [resolvable:$true] %s265_s17 }
  0x16   : > { %2807 = sst [smem:[#allocation19_spill]] %s2806_s14  ;;  %s2322_s19 = smov [#allocation10]  }
  0x17   : > { %p1978_p9 = pneg %p2435_p8  ;;  %s281_s20 = sshll.u32 %s2322_s19, 4  ;;  %s282_s20 = int_to_ptr.vmem [resolvable:$true] %s281_s20 }
  0x18   : > { %s2323_s21 = smov [#allocation12]   ;;  %s2104_s23 = scalar_lea.vmem %s266_s17, 256 }
  0x19   : > { %p2444_p11 = pnand %p1978_p9, %p2797_p1  ;;  %s297_s22 = sshll.u32 %s2323_s21, 4  ;;  %s298_s22 = int_to_ptr.vmem [resolvable:$true] %s297_s22 }
  0x1a   : > { %p2105_p13 = scmp.ne.s32.totalorder %s266_s17, %s2104_s23  ;;  %p2112_p5 = scmp.lt.s32.totalorder %s266_s17, %s266_s17 }
  0x1b   : > { %p2095_p12 = pneg %p2444_p11  ;;  %p2113_p7 = scmp.lt.s32.totalorder %s2104_s23, %s2104_s23 }
  0x1d   : > { %p2107_p0 = pnand %p2105_p13, %p2095_p12  ;;  %p2114_p9 = por %p2113_p7, %p2112_p5 }
  0x1f   : > { %p2108_p3 = pneg %p2107_p0 }
  0x21   : > { %p2115_p10 = pnand %p2114_p9, %p2108_p3 }
  0x23   : > { %2118 = shalt.err (!%p2115_p10)
}
  0x24   : > { %s2324_s24 = smov 64   ;;  %s2325_s25 = smov 4  }
  0x25   : > { %s2810_s2 = sld [smem:[#allocation22_spill]]  ;;  %s2130_s16 = scalar_lea.vmem %s282_s20, 256 }
  0x26   : > { %p2131_p1 = scmp.ne.s32.totalorder %s282_s20, %s2130_s16  ;;  %p2138_p2 = scmp.lt.s32.totalorder %s282_s20, %s282_s20 }
  0x27   : > { %p2139_p6 = scmp.lt.s32.totalorder %s2130_s16, %s2130_s16 }
  0x28   : > { %p2133_p13 = pnand %p2131_p1, %p2095_p12 }
  0x29   : > { %p2140_p5 = por %p2139_p6, %p2138_p2 }
  0x2a   : > { %p2134_p0 = pneg %p2133_p13 }
  0x2b   : > { %1981 = dma.hbm_to_vmem [thread:$0]  (!%p2444_p11), %s2810_s2, 256, %s266_s17, [#allocation8], %s2324_s24, %s2324_s24, %s2325_s25  }
  0x2c   : > { %p2141_p3 = pnand %p2140_p5, %p2134_p0 }
  0x2e   : > { %2144 = shalt.err (!%p2141_p3)
}
  0x2f   : > { %s2811_s4 = sld [smem:[#allocation23_spill]]  ;;  %s2156_s17 = scalar_lea.vmem %s298_s22, 256 }
  0x30   : > { %p2157_p10 = scmp.ne.s32.totalorder %s298_s22, %s2156_s17  ;;  %p2164_p9 = scmp.lt.s32.totalorder %s298_s22, %s298_s22 }
  0x31   : > { %p2165_p13 = scmp.lt.s32.totalorder %s2156_s17, %s2156_s17 }
  0x32   : > { %p2159_p7 = pnand %p2157_p10, %p2095_p12 }
  0x33   : > { %p2166_p4 = por %p2165_p13, %p2164_p9 }
  0x34   : > { %p2160_p1 = pneg %p2159_p7 }
  0x35   : > { %1984 = dma.hbm_to_vmem [thread:$0]  (!%p2444_p11), %s2811_s4, 256, %s282_s20, [#allocation11], %s2324_s24, %s2324_s24, %s2325_s25  }
  0x36   : > { %p2167_p2 = pnand %p2166_p4, %p2160_p1 }
  0x38   : > { %2170 = shalt.err (!%p2167_p2)
}
  0x39   : > { %s2812_s6 = sld [smem:[#allocation24_spill]]  ;;  %s49_s20 = sadd.s32 1, %s2307_s29 }
  0x3a   : > { %s40_s12 = sadd.s32 1, %s2315_s9  ;;  %p56_p4 = scmp.ne.s32.totalorder %s2307_s29, %s2303_s28 }
  0x3b   : > { %p42_p6 = scmp.ge.s32.totalorder %s40_s12, 2  ;;  %p57_p12 = scmp.eq.s32.totalorder %s2319_s10, 0 }
  0x3c   : > { %p2813_p0 = scmp.eq.s32.totalorder %s2416_s11, 1  ;;  %p2002_p3 = scmp.lt.s32.totalorder %s2319_s10, 2 }
  0x3d   : > { %s2833_s12 = smov (%p42_p6, %s40_s12), 0  ;;  %p58_p10 = por %p57_p12, %p56_p4 }
  0x3e   : > { %p2481_p5 = por %p2813_p0, %p56_p4  ;;  %2815 = sst [smem:[#allocation20_spill]] %s2833_s12 }
  0x3f   : > { %1987 = dma.hbm_to_vmem [thread:$0]  (!%p2444_p11), %s2812_s6, 256, %s298_s22, [#allocation11], %s2324_s24, %s2324_s24, %s2325_s25  }
  0x40   : > { %s314_s16 = sand.u32 1, %s2307_s29   ;;  %s44_s19 = ssub.s32 %s2315_s9, %s2833_s12 }
  0x41   : > { %p47_p11 = scmp.eq.s32.totalorder %s44_s19, 0  ;;  %s1820_s22 = sshll.u32 %s314_s16, 2 }
  0x42   : > { %s1821_s24 = sshll.u32 %s2315_s9, 6  ;;  %s2816_s0 = sld [smem:[#allocation21_spill]] }
  0x43   : > { %s2493_s25 = scalar_select %p47_p11, %s2307_s29, %s49_s20  }
  0x44   : > { %s318_s26 = scalar_lea.vmem [#allocation4], %s1820_s22  ;;  %p2500_p7 = pnand %p2002_p3, %p58_p10 }
  0x45   : > { %s326_s2 = sshll.u32 %s318_s26, 4  ;;  %s2507_s19 = scalar_lea.hbm %s2789_s1, %s1821_s24  ;;  %s327_s2 = int_to_ptr.vmem [resolvable:$true] %s326_s2 }
  0x46   : > { %s333_s20 = sand.u32 1, %s2319_s10   ;;  %s315_s12 = scalar_lea.sflag [#allocation5], %s314_s16 }
  0x47   : > { %p2173_p1 = pneg %p2500_p7  ;;  %s2184_s21 = scalar_lea.vmem %s327_s2, 64 }
  0x48   : > { %s324_s23 = scalar_lea.hbm %s2816_s0, %s1821_s24  ;;  %p2185_p9 = scmp.ne.s32.totalorder %s327_s2, %s2184_s21 }
  0x49   : > { %s2326_s17 = smov [#allocation4]  }
  0x4a   : > { %p2187_p13 = pnand %p2185_p9, %p2173_p1  ;;  %s2189_s26 = sshll.u32 %s2326_s17, 4  ;;  %s2190_s26 = int_to_ptr.vmem [resolvable:$false] %s2189_s26 }
  0x4b   : > { %s2191_s0 = scalar_lea.vmem %s2190_s26, 128  ;;  %p2192_p4 = scmp.lt.s32.totalorder %s327_s2, %s2190_s26 }
  0x4c   : > { %p2188_p2 = pneg %p2187_p13  ;;  %p2193_p6 = scmp.lt.s32.totalorder %s2191_s0, %s2184_s21 }
  0x4e   : > { %p2194_p12 = por %p2193_p6, %p2192_p4 }
  0x50   : > { %p2195_p0 = pnand %p2194_p12, %p2188_p2 }
  0x52   : > { %2198 = shalt.err (!%p2195_p0)
}
  0x53   : > { %1991 = dma.hbm_to_vmem [thread:$0]  (!%p2500_p7), %s324_s23, 64, %s327_s2, %s315_s12  }
  0x54   : > { %s337_s6 = scalar_lea.vmem [#allocation7], %s1820_s22  ;;  %s334_s16 = scalar_lea.sflag [#allocation8], %s333_s20 }
  0x55   : > { %s344_s14 = sshll.u32 %s337_s6, 4  ;;  %s2327_s17 = smov [#allocation7]   ;;  %s345_s14 = int_to_ptr.vmem [resolvable:$true] %s344_s14 }
  0x56   : > { %s2212_s24 = scalar_lea.vmem %s345_s14, 64  ;;  %s2217_s26 = sshll.u32 %s2327_s17, 4  ;;  %s2218_s26 = int_to_ptr.vmem [resolvable:$false] %s2217_s26 }
  0x57   : > { %p2213_p3 = scmp.ne.s32.totalorder %s345_s14, %s2212_s24  ;;  %s2219_s0 = scalar_lea.vmem %s2218_s26, 128 }
  0x58   : > { %p2220_p9 = scmp.lt.s32.totalorder %s345_s14, %s2218_s26  ;;  %p2221_p13 = scmp.lt.s32.totalorder %s2219_s0, %s2212_s24 }
  0x59   : > { %p2215_p10 = pnand %p2213_p3, %p2173_p1 }
  0x5a   : > { %p2222_p2 = por %p2221_p13, %p2220_p9 }
  0x5b   : > { %p2216_p11 = pneg %p2215_p10 }
  0x5d   : > { %p2223_p4 = pnand %p2222_p2, %p2216_p11 }
  0x5f   : > { %2226 = shalt.err (!%p2223_p4)
}
  0x60   : > { %1994 = dma.hbm_to_vmem [thread:$0]  (!%p2500_p7), %s2507_s19, 64, %s345_s14, %s334_s16  }
  0x61   : > { %353 = sbr.rel (%p2435_p8) target bundleno = 1535 (0x5ff), region = 52  ;;  %s2526_s2 = sand.u32 (!%p2435_p8), 1, %s2303_s28  }
  0x62   : > { %s1825_s12 = sshll.u32 (!%p2435_p8), %s2526_s2, 2  ;;  %s356_s22 = scalar_lea.sflag (!%p2435_p8), [#allocation5], %s2526_s2 }
  0x63   : > { %s2530_s23 = scalar_lea.vmem (!%p2435_p8), [#allocation4], %s1825_s12  ;;  %p2818_p1 = scmp.ne.s32.totalorder (!%p2435_p8), %s2805_s13, 0 }
  0x66   : > { %2278 = dma.done.wait (%p2818_p1), %s356_s22, 64  }
  0x67   : > { %2280 = vsyncadd (%p2818_p1), %s356_s22, 4294967232  ;;  %s364_s4 = sand.u32 1, %s2416_s11   ;;  %s368_s19 = scalar_lea.vmem [#allocation7], %s1825_s12 }
  0x68   : > { %s365_s15 = scalar_lea.sflag [#allocation8], %s364_s4 }
  0x69   : > { %2282 = dma.done.wait (%p2818_p1), %s365_s15, 64  }
  0x6a   : > { %2284 = vsyncadd (%p2818_p1), %s365_s15, 4294967232  ;;  %p2819_p8 = scmp.eq.s32.totalorder %s2416_s11, 0 }
  0x6c   : > { %2286 = dma.done.wait (%p2819_p8), [#allocation8], 256   ;;  %p2820_p7 = pmov %p2819_p8 }
  0x6e   : > { %2288 = vsyncadd (%p2820_p7), [#allocation8], 4294967040  ;;  %p2821_p6 = pmov %p2820_p7 }
  0x70   : > { %2290 = dma.done.wait (%p2821_p6), [#allocation11], 512   ;;  %p2822_p12 = pmov %p2821_p6 }
  0x71   : > { %v2328_v0 = vmov 0.0   ;;  %vm2329_vm0 = vmmov 0   ;;  %v2071_v1 = vld [vmem:[#allocation10 + $0x8] sm:$0xff]   ;;  %v2072_v2 = vld [vmem:[#allocation10] sm:$0xff]   ;;  %v2073_v3 = vld [vmem:[#allocation9 + $0x8] sm:$0xff]   ;;  %vm447_vm1 = vcmask 261120   ;;  %v506_v21 = vlaneseq }
  0x72   : > { %2292 = vsyncadd (%p2822_p12), [#allocation11], 4294966784  ;;  %1888 = vmatprep.subr.bf16.mxu0 %v2328_v0  ;;  %1896 = vmatprep.subr.bf16.mxu1 %v2328_v0  ;;  %v2074_v4 = vld [vmem:[#allocation9] sm:$0xff]   ;;  %v423_v5 = vld [vmem:[%s368_s19] sm:$0xf]  ;;  %s2330_s6 = smov 104  }
  0x73   : > { %1892 = vmatprep.mubr.msk.bf16.mxu0 %vm2329_vm0, %v2328_v0  ;;  %1900 = vmatprep.mubr.msk.bf16.mxu1 %vm2329_vm0, %v2328_v0  ;;  %v802_v6 = vld [vmem:[%s2530_s23] sm:$0xf]  ;;  %s2331_s14 = smov 120   ;;  %s2332_s16 = smov 112   ;;  %v2333_v19 = vmov 1983009808  }
  0x74   : > { %1889 = vmatpush3.bf16.msra.mxu0 %v2071_v1  ;;  %1897 = vmatpush3.bf16.msra.mxu1 %v2073_v3  ;;  %v1831_v7 = vld [vmem:[%s2793_s5] ss:$0 sm:$0xff]  ;;  %v504_v20 = vunpack.c.l.s4 %v2333_v19  ;;  %v2334_v22 = vmov 1934713408   ;;  %v507_v25 = vshrl.u32 %v506_v21, 7  ;;  %vm641_vm2 = vcmask 60416  }
  0x75   : > { %1890 = vmatprep.subr.bf16.mxu0 %v2328_v0  ;;  %1898 = vmatprep.subr.bf16.mxu1 %v2328_v0  ;;  %v1839_v9 = vld [vmem:[%s2791_s3] ss:$0 sm:$0xff]  ;;  %v536_v23 = vunpack.c.l.s4 %v2334_v22  ;;  %vm1024_vm3 = vcmask 64512   ;;  %s2335_s24 = smov 96   ;;  %vm1264_vm4 = vcmask 1043456   ;;  %s2336_s17 = smov 16  }
  0x76   : > { %v505_v24 = vunpack.c.0.s8 %v504_v20  ;;  %s2337_s26 = smov 8   ;;  %s2338_s0 = smov 24   ;;  %vm1595_vm5 = vcmask 130048   ;;  %vm1597_vm6 = vcmask 195584  }
  0x77   : > { %v537_v28 = vunpack.c.0.s8 %v536_v23  ;;  %s1830_s12 = sshll.u32 %s2526_s2, 3  ;;  %s1860_s4 = sshll.u32 %s2311_s30, 7 }
  0x78   : > { %1891 = vmatpush3.bf16.msra.mxu0 %v2072_v2  ;;  %1899 = vmatpush3.bf16.msra.mxu1 %v2074_v4  ;;  %v2581_v29 = vsub.s32 %v505_v24, %v507_v25  ;;  %s417_s15 = scalar_lea.vmem [#allocation13], %s1830_s12  ;;  %s2739_s20 = scalar_lea.hbm %s2796_s8, %s1860_s4 }
  0x79   : > { %1904 = vmatprep.subr.bf16.mxu0 %v2328_v0  ;;  %1910 = vmatprep.subr.bf16.mxu1 %v2328_v0  ;;  %v2593_v36 = vsub.s32 %v537_v28, %v507_v25  ;;  %s1682_s19 = sshll.u32 %s417_s15, 4  ;;  %s1668_s21 = scalar_lea.sflag [#allocation6], %s2526_s2  ;;  %s2741_s19 = int_to_ptr.vmem [resolvable:$true] %s1682_s19 }
  0x7a   : > { %s2227_s30 = scalar_lea.vmem %s2741_s19, 128 }
  0x7b   : > { %1893 = vmatmul.mubr.msk.bf16.vlgmr.msra.gmra.mxu0 %vm447_vm1, %v423_v5  ;;  %1901 = vmatmul.mubr.msk.bf16.vlgmr.msra.gmra.mxu1 %vm447_vm1, %v802_v6  ;;  %p2228_p0 = scmp.ne.s32.totalorder %s2741_s19, %s2227_s30 }
  0x7c   : > { %1906 = vmatprep.mubr.msk.bf16.mxu0 %vm2329_vm0, %v2328_v0  ;;  %1912 = vmatprep.mubr.msk.bf16.mxu1 %vm2329_vm0, %v2328_v0 }
  0x7d   : > { %p2229_p3 = pnand %p2228_p0, %p2481_p5 }
  0x7f   : > { %p2230_p10 = pneg %p2229_p3 }
 0x13b   : > { %v485_v8 = vpop.f32.mrf.mxu0  ;;  %v864_v12 = vpop.f32.mrf.mxu1 }
 0x13c   : > { %v2572_v10 = vadd.f32 %v1831_v7, %v485_v8  ;;  %v865_v13 = vadd.f32 %v1839_v9, %v864_v12 }
 0x13d   : > { %v1894_v11 = vpop.f32.mrf.mxu0  ;;  %v1902_v15 = vpop.f32.mrf.mxu1 }
 0x13e   : > { %498 = vrot.lane.b32.xlu1 %v2572_v10, %s2330_s6  ;;  %492 = vrot.lane.b32.xlu0 %v2572_v10, %s2331_s14 }
 0x13f   : > { %v488_v14 = vpop.f32.mrf.mxu0  ;;  %v867_v17 = vpop.f32.mrf.mxu1 }
 0x141   : > { %v1895_v16 = vpop.f32.mrf.mxu0  ;;  %v1903_v18 = vpop.f32.mrf.mxu1 }
 0x142   : > { %871 = vrot.lane.b32.xlu1 %v865_v13, %s2331_s14  ;;  %495 = vrot.lane.b32.xlu0 %v2572_v10, %s2332_s16 }
 0x146   : > { %877 = vrot.lane.b32.xlu1 %v865_v13, %s2330_s6  ;;  %874 = vrot.lane.b32.xlu0 %v865_v13, %s2332_s16  ;;  %s2339_s6 = smov [#allocation13]  }
 0x147   : > { %s2231_s14 = sshll.u32 %s2339_s6, 4  ;;  %s2232_s14 = int_to_ptr.vmem [resolvable:$false] %s2231_s14 }
 0x148   : > { %s2233_s16 = scalar_lea.vmem %s2232_s14, 256  ;;  %p2234_p11 = scmp.lt.s32.totalorder %s2741_s19, %s2232_s14 }
 0x149   : > { %p2235_p9 = scmp.lt.s32.totalorder %s2233_s16, %s2227_s30 }
 0x14b   : > { %p2236_p13 = por %p2235_p9, %p2234_p11 }
 0x14d   : > { %p2237_p2 = pnand %p2236_p13, %p2230_p10 }
 0x1b0   : > { %v2577_v26 = vpop.permute.xlu1 %498  ;;  %v2579_v27 = vpop.permute.xlu0 %492 }
 0x1b1   : > { %v517_v30 = vcombine.low %v2579_v27, %v2577_v26  ;;  %v518_v31 = vcombine.high %v2579_v27, %v2577_v26 }
 0x1b3   : > { %v525_v37 = vrot.slane %v517_v30, %v2581_v29  ;;  %v532_v38 = vrot.slane %v518_v31, %v2581_v29 }
 0x1b4   : > { %v872_v32 = vpop.permute.xlu1 %871  ;;  %v2587_v33 = vpop.permute.xlu0 %495 }
 0x1b5   : > { %v501_v34 = vcombine.low %v2572_v10, %v2587_v33  ;;  %v502_v35 = vcombine.high %v2572_v10, %v2587_v33 }
 0x1b7   : > { %v509_v39 = vrot.slane %v501_v34, %v2581_v29  ;;  %v516_v40 = vrot.slane %v502_v35, %v2581_v29 }
 0x1b8   : > { %v878_v41 = vpop.permute.xlu1 %877  ;;  %v875_v42 = vpop.permute.xlu0 %874 }
 0x1b9   : > { %v533_v43 = vcombine.low %v509_v39, %v525_v37  ;;  %v534_v44 = vcombine.high %v509_v39, %v525_v37  ;;  %v549_v45 = vcombine.low %v516_v40, %v532_v38  ;;  %v550_v46 = vcombine.high %v516_v40, %v532_v38 }
 0x1ba   : > { %v896_v47 = vcombine.low %v872_v32, %v878_v41  ;;  %v897_v48 = vcombine.high %v872_v32, %v878_v41  ;;  %v880_v49 = vcombine.low %v865_v13, %v875_v42  ;;  %v881_v50 = vcombine.high %v865_v13, %v875_v42 }
 0x1bb   : > { %v541_v51 = vrot.slane %v533_v43, %v2593_v36  ;;  %v548_v52 = vrot.slane %v534_v44, %v2593_v36  ;;  %v557_v53 = vrot.slane %v549_v45, %v2593_v36  ;;  %v564_v54 = vrot.slane %v550_v46, %v2593_v36 }
 0x1bc   : > { %v904_v55 = vrot.slane %v896_v47, %v2581_v29  ;;  %v911_v56 = vrot.slane %v897_v48, %v2581_v29  ;;  %v888_v57 = vrot.slane %v880_v49, %v2581_v29  ;;  %v895_v58 = vrot.slane %v881_v50, %v2581_v29 }
 0x1bd   : > { %v569_v59 = vcombine.low %v541_v51, %v548_v52  ;;  %v1835_v60 = vcombine.high %v541_v51, %v548_v52  ;;  %v585_v61 = vcombine.low %v557_v53, %v564_v54  ;;  %v1836_v62 = vcombine.high %v557_v53, %v564_v54 }
 0x1be   : > { %v912_v63 = vcombine.low %v888_v57, %v904_v55  ;;  %v913_v1 = vcombine.high %v888_v57, %v904_v55  ;;  %v928_v2 = vcombine.low %v895_v58, %v911_v56  ;;  %v929_v3 = vcombine.high %v895_v58, %v911_v56 }
 0x1bf   : > { %v576_v4 = vrot.slane %v569_v59, %v2581_v29  ;;  %v584_v5 = vrot.slane %v1835_v60, %v2581_v29  ;;  %v592_v6 = vrot.slane %v585_v61, %v2581_v29  ;;  %v600_v7 = vrot.slane %v1836_v62, %v2581_v29 }
 0x1c0   : > { %v920_v8 = vrot.slane %v912_v63, %v2593_v36  ;;  %v927_v9 = vrot.slane %v913_v1, %v2593_v36  ;;  %v936_v11 = vrot.slane %v928_v2, %v2593_v36  ;;  %v943_v12 = vrot.slane %v929_v3, %v2593_v36 }
 0x1c1   : > { %v601_v13 = vcombine.low %v576_v4, %v584_v5  ;;  %v602_v14 = vcombine.high %v576_v4, %v584_v5  ;;  %v617_v15 = vcombine.low %v592_v6, %v600_v7  ;;  %v618_v16 = vcombine.high %v592_v6, %v600_v7 }
 0x1c2   : > { %v948_v17 = vcombine.low %v920_v8, %v927_v9  ;;  %v1843_v18 = vcombine.high %v920_v8, %v927_v9  ;;  %v964_v19 = vcombine.low %v936_v11, %v943_v12  ;;  %v1844_v20 = vcombine.high %v936_v11, %v943_v12 }
 0x1c3   : > { %v609_v21 = vrot.slane %v601_v13, %v2593_v36  ;;  %v616_v22 = vrot.slane %v602_v14, %v2593_v36  ;;  %v625_v23 = vrot.slane %v617_v15, %v2593_v36  ;;  %v632_v24 = vrot.slane %v618_v16, %v2593_v36 }
 0x1c4   : > { %v955_v32 = vrot.slane %v948_v17, %v2581_v29  ;;  %v963_v34 = vrot.slane %v1843_v18, %v2581_v29  ;;  %v971_v35 = vrot.slane %v964_v19, %v2581_v29  ;;  %v979_v37 = vrot.slane %v1844_v20, %v2581_v29 }
 0x1c5   : > { %v633_v25 = vcombine.low %v609_v21, %v625_v23  ;;  %v634_v28 = vcombine.high %v609_v21, %v625_v23  ;;  %v635_v30 = vcombine.low %v616_v22, %v632_v24  ;;  %v636_v31 = vcombine.high %v616_v22, %v632_v24 }
 0x1c6   : > { %v980_v42 = vcombine.low %v955_v32, %v963_v34  ;;  %v996_v43 = vcombine.low %v971_v35, %v979_v37  ;;  %v981_v50 = vcombine.high %v955_v32, %v963_v34  ;;  %v997_v51 = vcombine.high %v971_v35, %v979_v37 }
 0x1c7   : > { %v637_v38 = vpack.c.bf16 %v633_v25, %v633_v25  ;;  %v638_v39 = vpack.c.bf16 %v634_v28, %v634_v28  ;;  %v639_v40 = vpack.c.bf16 %v635_v30, %v635_v30  ;;  %v640_v41 = vpack.c.bf16 %v636_v31, %v636_v31 }
 0x1c8   : > { %v988_v44 = vrot.slane %v980_v42, %v2593_v36  ;;  %v1004_v45 = vrot.slane %v996_v43, %v2593_v36  ;;  %v995_v58 = vrot.slane %v981_v50, %v2593_v36  ;;  %v1011_v59 = vrot.slane %v997_v51, %v2593_v36 }
 0x1c9   : > { %642 = vst.msk [vmem:[#allocation2] sm:$0xf] %vm641_vm2, %v637_v38  ;;  %643 = vst.msk [vmem:[#allocation2 + $0x4] sm:$0xf] %vm641_vm2, %v638_v39 }
 0x1ca   : > { %644 = vst.msk [vmem:[#allocation2 + $0x8] sm:$0xf] %vm641_vm2, %v639_v40  ;;  %645 = vst.msk [vmem:[#allocation2 + $0xc] sm:$0xf] %vm641_vm2, %v640_v41  ;;  %v1012_v52 = vcombine.low %v988_v44, %v1004_v45  ;;  %v1013_v53 = vcombine.high %v988_v44, %v1004_v45  ;;  %v1014_v62 = vcombine.low %v995_v58, %v1011_v59 }
 0x1cb   : > { %v1015_v63 = vcombine.high %v995_v58, %v1011_v59 }
 0x1cc   : > { %v1016_v56 = vpack.c.bf16 %v1012_v52, %v1012_v52  ;;  %v1017_v57 = vpack.c.bf16 %v1013_v53, %v1013_v53  ;;  %v1018_v1 = vpack.c.bf16 %v1014_v62, %v1014_v62 }
 0x1cd   : > { %v1019_v2 = vpack.c.bf16 %v1015_v63, %v1015_v63 }
 0x1d0   : > { %v1020_v46 = vld [vmem:[#allocation2] sm:$0xf]  ;;  %v1021_v47 = vld [vmem:[#allocation2 + $0x4] sm:$0xf] }
 0x1d1   : > { %v1029_v48 = vsel %vm1024_vm3, %v1020_v46, 0  ;;  %v1075_v49 = vsel %vm1024_vm3, %v1021_v47, 0  ;;  %v1022_v54 = vld [vmem:[#allocation2 + $0x8] sm:$0xf]  ;;  %v1023_v55 = vld [vmem:[#allocation2 + $0xc] sm:$0xf] }
 0x1d2   : > { %1905 = vmatpush3.bf16.xpose.msra.mxu0 %v1029_v48  ;;  %1911 = vmatpush3.bf16.xpose.msra.mxu1 %v1075_v49  ;;  %v1121_v60 = vsel %vm1024_vm3, %v1022_v54, 0  ;;  %v1167_v61 = vsel %vm1024_vm3, %v1023_v55, 0 }
 0x1d3   : > { %1916 = vmatprep.subr.bf16.mxu0 %v2328_v0  ;;  %1922 = vmatprep.subr.bf16.mxu1 %v2328_v0 }
 0x1d9   : > { %1907 = vmatmul.mubr.msk.bf16.vlgmr.msra.gmra.mxu0 %vm1024_vm3, %v1016_v56  ;;  %1913 = vmatmul.mubr.msk.bf16.vlgmr.msra.gmra.mxu1 %vm1024_vm3, %v1017_v57 }
 0x1da   : > { %1917 = vmatpush3.bf16.xpose.msra.mxu0 %v1121_v60  ;;  %1923 = vmatpush3.bf16.xpose.msra.mxu1 %v1167_v61 }
 0x1db   : > { %1918 = vmatprep.mubr.msk.bf16.mxu0 %vm2329_vm0, %v2328_v0  ;;  %1924 = vmatprep.mubr.msk.bf16.mxu1 %vm2329_vm0, %v2328_v0 }
 0x1dc   : > { %1928 = vmatprep.subr.bf16.mxu0 %v2328_v0  ;;  %1934 = vmatprep.subr.bf16.mxu1 %v2328_v0 }
 0x1e1   : > { %1919 = vmatmul.mubr.msk.bf16.vlgmr.msra.gmra.mxu0 %vm1024_vm3, %v1018_v1  ;;  %1925 = vmatmul.mubr.msk.bf16.vlgmr.msra.gmra.mxu1 %vm1024_vm3, %v1019_v2 }
 0x1e2   : > { %1930 = vmatprep.mubr.msk.bf16.mxu0 %vm2329_vm0, %v2328_v0  ;;  %1936 = vmatprep.mubr.msk.bf16.mxu1 %vm2329_vm0, %v2328_v0 }
 0x299   : > { %v1065_v3 = vpop.f32.mrf.mxu0  ;;  %v1111_v4 = vpop.f32.mrf.mxu1 }
 0x29a   : > { %v1212_v5 = vsel %vm1024_vm3, %v1111_v4, -inf  ;;  %v1209_v6 = vsel %vm1024_vm3, %v1065_v3, -inf }
 0x29b   : > { %1213 = vmax.xlane.f32.xlu1 %v1212_v5  ;;  %v1914_v7 = vpop.f32.mrf.mxu1  ;;  %1210 = vmax.xlane.f32.xlu0 %v1209_v6  ;;  %v1908_v8 = vpop.f32.mrf.mxu0 }
 0x29d   : > { %v1068_v9 = vpop.f32.mrf.mxu0  ;;  %v1114_v11 = vpop.f32.mrf.mxu1 }
 0x29f   : > { %v1909_v12 = vpop.f32.mrf.mxu0  ;;  %v1915_v13 = vpop.f32.mrf.mxu1 }
 0x2a1   : > { %v1157_v14 = vpop.f32.mrf.mxu0  ;;  %v1203_v15 = vpop.f32.mrf.mxu1 }
 0x2a2   : > { %v1215_v16 = vsel %vm1024_vm3, %v1157_v14, -inf  ;;  %v1218_v21 = vsel %vm1024_vm3, %v1203_v15, -inf }
 0x2a3   : > { %v1926_v17 = vpop.f32.mrf.mxu1  ;;  %1216 = vmax.xlane.f32.xlu0 %v1215_v16  ;;  %v1920_v18 = vpop.f32.mrf.mxu0 }
 0x2a5   : > { %v1160_v19 = vpop.f32.mrf.mxu0  ;;  %v1206_v20 = vpop.f32.mrf.mxu1 }
 0x2a7   : > { %v1927_v22 = vpop.f32.mrf.mxu1  ;;  %1219 = vmax.xlane.f32.xlu0 %v1218_v21  ;;  %v1921_v23 = vpop.f32.mrf.mxu0 }
 0x2ac   : > { %646 = vrot.lane.b32.xlu1 %v2572_v10, %s2335_s24 }
 0x2b0   : > { %650 = vrot.lane.b32.xlu1 %v2587_v33, %s2335_s24 }
 0x2b4   : > { %652 = vrot.lane.b32.xlu1 %v2577_v26, %s2335_s24 }
 0x2bd   : > { %648 = vrot.lane.b32.xlu0 %v2579_v27, %s2335_s24 }
 0x324   : > { %v1214_v24 = vpop.xlane.xlu1 %1213  ;;  %v1211_v25 = vpop.xlane.xlu0 %1210 }
 0x325   : > { %v1222_v28 = vsub.f32 %v1111_v4, %v1214_v24  ;;  %v1221_v30 = vsub.f32 %v1065_v3, %v1211_v25 }
 0x327   : > { %v1227_v31 = vmul.f32 1.442695, %v1222_v28  ;;  %v1225_v32 = vmul.f32 1.442695, %v1221_v30 }
 0x328   : > { %v647_v34 = vpop.permute.xlu1 %646 }
 0x329   : > { %2077 = vpow2.f32 %v1227_v31 }
 0x32a   : > { %2079 = vpow2.f32 %v1225_v32 }
 0x32c   : > { %v1217_v35 = vpop.xlane.xlu0 %1216  ;;  %v651_v38 = vpop.permute.xlu1 %650 }
 0x32d   : > { %v1223_v37 = vsub.f32 %v1157_v14, %v1217_v35  ;;  %v658_v40 = vcombine.low %v647_v34, %v651_v38  ;;  %v659_v26 = vcombine.high %v647_v34, %v651_v38 }
 0x32f   : > { %v1229_v39 = vmul.f32 1.442695, %v1223_v37  ;;  %v666_v46 = vrot.slane %v658_v40, %v2581_v29  ;;  %v673_v48 = vrot.slane %v659_v26, %v2581_v29 }
 0x330   : > { %v1220_v10 = vpop.xlane.xlu0 %1219  ;;  %v653_v27 = vpop.permute.xlu1 %652 }
 0x331   : > { %2081 = vpow2.f32 %v1229_v39  ;;  %v1224_v33 = vsub.f32 %v1203_v15, %v1220_v10 }
 0x333   : > { %v1231_v41 = vmul.f32 1.442695, %v1224_v33 }
 0x334   : > { %v649_v42 = vpop.permute.xlu0 %648 }
 0x335   : > { %2083 = vpow2.f32 %v1231_v41  ;;  %v674_v43 = vcombine.low %v649_v42, %v653_v27  ;;  %v675_v44 = vcombine.high %v649_v42, %v653_v27 }
 0x336   : > { %v2659_v45 = vpop.eup %2077 }
 0x337   : > { %v2662_v47 = vpop.eup %2079  ;;  %v682_v49 = vrot.slane %v674_v43, %v2581_v29  ;;  %v689_v50 = vrot.slane %v675_v44, %v2581_v29  ;;  %v1236_v51 = vsel %vm1024_vm3, %v2659_v45, 0.0 }
 0x338   : > { %1237 = vadd.xlane.f32.xlu1 %v1236_v51  ;;  %v1233_v52 = vsel %vm1024_vm3, %v2662_v47, 0.0 }
 0x339   : > { %v690_v53 = vcombine.low %v666_v46, %v682_v49  ;;  %v691_v54 = vcombine.high %v666_v46, %v682_v49  ;;  %v706_v55 = vcombine.low %v673_v48, %v689_v50  ;;  %v707_v56 = vcombine.high %v673_v48, %v689_v50  ;;  %1234 = vadd.xlane.f32.xlu0 %v1233_v52 }
 0x33b   : > { %v698_v57 = vrot.slane %v690_v53, %v2593_v36  ;;  %v705_v58 = vrot.slane %v691_v54, %v2593_v36  ;;  %v714_v59 = vrot.slane %v706_v55, %v2593_v36  ;;  %v721_v60 = vrot.slane %v707_v56, %v2593_v36 }
 0x33d   : > { %v726_v61 = vcombine.low %v698_v57, %v705_v58  ;;  %v1837_v62 = vcombine.high %v698_v57, %v705_v58  ;;  %v742_v63 = vcombine.low %v714_v59, %v721_v60  ;;  %v1838_v1 = vcombine.high %v714_v59, %v721_v60 }
 0x33e   : > { %v2675_v2 = vpop.eup %2081 }
 0x33f   : > { %v733_v3 = vrot.slane %v726_v61, %v2581_v29  ;;  %v741_v4 = vrot.slane %v1837_v62, %v2581_v29  ;;  %v749_v5 = vrot.slane %v742_v63, %v2581_v29  ;;  %v757_v6 = vrot.slane %v1838_v1, %v2581_v29 }
 0x340   : > { %v1239_v7 = vsel %vm1024_vm3, %v2675_v2, 0.0 }
 0x341   : > { %v758_v8 = vcombine.low %v733_v3, %v741_v4  ;;  %v759_v9 = vcombine.high %v733_v3, %v741_v4  ;;  %v774_v11 = vcombine.low %v749_v5, %v757_v6  ;;  %v775_v12 = vcombine.high %v749_v5, %v757_v6  ;;  %1240 = vadd.xlane.f32.xlu0 %v1239_v7 }
 0x342   : > { %v2084_v13 = vpop.eup %2083 }
 0x343   : > { %v766_v14 = vrot.slane %v758_v8, %v2593_v36  ;;  %v773_v15 = vrot.slane %v759_v9, %v2593_v36  ;;  %v782_v16 = vrot.slane %v774_v11, %v2593_v36  ;;  %v789_v17 = vrot.slane %v775_v12, %v2593_v36 }
 0x344   : > { %v1242_v18 = vsel %vm1024_vm3, %v2084_v13, 0.0 }
 0x345   : > { %v790_v19 = vcombine.low %v766_v14, %v782_v16  ;;  %v791_v20 = vcombine.high %v766_v14, %v782_v16  ;;  %v792_v21 = vcombine.low %v773_v15, %v789_v17  ;;  %v793_v22 = vcombine.high %v773_v15, %v789_v17  ;;  %1243 = vadd.xlane.f32.xlu0 %v1242_v18  ;;  %v2075_v17 = vld [vmem:[#allocation12 + $0x8] sm:$0xff]  }
 0x347   : > { %v794_v23 = vpack.c.bf16 %v790_v19, %v790_v19  ;;  %v795_v24 = vpack.c.bf16 %v791_v20, %v791_v20  ;;  %v796_v25 = vpack.c.bf16 %v792_v21, %v792_v21  ;;  %v797_v28 = vpack.c.bf16 %v793_v22, %v793_v22 }
 0x349   : > { %798 = vst.msk [vmem:[#allocation3] sm:$0xf] %vm641_vm2, %v794_v23  ;;  %799 = vst.msk [vmem:[#allocation3 + $0x4] sm:$0xf] %vm641_vm2, %v795_v24 }
 0x34a   : > { %800 = vst.msk [vmem:[#allocation3 + $0x8] sm:$0xf] %vm641_vm2, %v796_v25  ;;  %801 = vst.msk [vmem:[#allocation3 + $0xc] sm:$0xf] %vm641_vm2, %v797_v28 }
 0x350   : > { %v1257_v30 = vld [vmem:[#allocation3] sm:$0xf]  ;;  %v1258_v31 = vld [vmem:[#allocation3 + $0x4] sm:$0xf] }
 0x351   : > { %v1266_v32 = vsel %vm1264_vm4, %v1257_v30, 0  ;;  %v1312_v34 = vsel %vm1264_vm4, %v1258_v31, 0  ;;  %v1260_v41 = vld [vmem:[#allocation3 + $0xc] sm:$0xf]  ;;  %v1259_v42 = vld [vmem:[#allocation3 + $0x8] sm:$0xf] }
 0x352   : > { %1929 = vmatpush3.bf16.msra.mxu0 %v1266_v32  ;;  %1935 = vmatpush3.bf16.msra.mxu1 %v1312_v34  ;;  %v1404_v44 = vsel %vm1264_vm4, %v1260_v41, 0  ;;  %v1358_v46 = vsel %vm1264_vm4, %v1259_v42, 0  ;;  %v2076_v30 = vld [vmem:[#allocation12] sm:$0xff]  }
 0x353   : > { %1940 = vmatprep.subr.bf16.mxu0 %v2328_v0  ;;  %1946 = vmatprep.subr.bf16.mxu1 %v2328_v0 }
 0x3c1   : > { %v1238_v35 = vpop.xlane.xlu1 %1237 }
 0x3c2   : > { %2085 = vrcp.f32 %v1238_v35  ;;  %v1235_v37 = vpop.xlane.xlu0 %1234 }
 0x3c3   : > { %2087 = vrcp.f32 %v1235_v37 }
 0x3ca   : > { %v1241_v38 = vpop.xlane.xlu0 %1240 }
 0x3cb   : > { %2089 = vrcp.f32 %v1241_v38 }
 0x3ce   : > { %v1244_v39 = vpop.xlane.xlu0 %1243 }
 0x3cf   : > { %v2086_v10 = vpop.eup %2085  ;;  %2091 = vrcp.f32 %v1244_v39 }
 0x3d0   : > { %v2088_v33 = vpop.eup %2087  ;;  %v1250_v40 = vmul.f32 %v2086_v10, %v2659_v45 }
 0x3d1   : > { %v1249_v26 = vmul.f32 %v2088_v33, %v2662_v47 }
 0x3d2   : > { %v1254_v27 = vpack.c.bf16 %v1250_v40, %v1250_v40 }
 0x3d3   : > { %v1253_v43 = vpack.c.bf16 %v1249_v26, %v1249_v26 }
 0x3d4   : > { %1937 = vmatmul.mubr.msk.bf16.vlgmr.msra.gmra.mxu1 %vm1024_vm3, %v1254_v27 }
 0x3d5   : > { %1931 = vmatmul.mubr.msk.bf16.vlgmr.msra.gmra.mxu0 %vm1024_vm3, %v1253_v43  ;;  %1947 = vmatpush3.bf16.msra.mxu1 %v1404_v44 }
 0x3d6   : > { %1941 = vmatpush3.bf16.msra.mxu0 %v1358_v46  ;;  %1942 = vmatprep.mubr.msk.bf16.mxu0 %vm2329_vm0, %v2328_v0 }
 0x3d7   : > { %1948 = vmatprep.mubr.msk.bf16.mxu1 %vm2329_vm0, %v2328_v0  ;;  %1952 = vmatprep.subr.bf16.mxu0 %v2328_v0 }
 0x3d8   : > { %v2090_v45 = vpop.eup %2089 }
 0x3d9   : > { %v1251_v47 = vmul.f32 %v2090_v45, %v2675_v2 }
 0x3db   : > { %v1255_v48 = vpack.c.bf16 %v1251_v47, %v1251_v47 }
 0x3dc   : > { %v2092_v49 = vpop.eup %2091 }
 0x3dd   : > { %1943 = vmatmul.mubr.msk.bf16.vlgmr.msra.gmra.mxu0 %vm1024_vm3, %v1255_v48  ;;  %v1252_v50 = vmul.f32 %v2092_v49, %v2084_v13  ;;  %v1855_v49 = vld [vmem:[%s2795_s7] ss:$0 sm:$0xff] }
 0x3de   : > { %1956 = vmatprep.mubr.msk.bf16.mxu0 %vm2329_vm0, %v2328_v0  ;;  %1953 = vmatpush3.bf16.msra.mxu0 %v2075_v17 }
 0x3df   : > { %v1256_v51 = vpack.c.bf16 %v1252_v50, %v1252_v50  ;;  %1954 = vmatprep.subr.bf16.mxu0 %v2328_v0 }
 0x3e1   : > { %1949 = vmatmul.mubr.msk.bf16.vlgmr.msra.gmra.mxu1 %vm1024_vm3, %v1256_v51 }
 0x3e2   : > { %1955 = vmatpush3.bf16.msra.mxu0 %v2076_v30 }
 0x494   : > { %v1348_v52 = vpop.f32.mrf.mxu1 }
 0x495   : > { %v1302_v53 = vpop.f32.mrf.mxu0 }
 0x496   : > { %v1938_v54 = vpop.f32.mrf.mxu1 }
 0x497   : > { %v1932_v55 = vpop.f32.mrf.mxu0 }
 0x498   : > { %v1351_v56 = vpop.f32.mrf.mxu1 }
 0x499   : > { %v1305_v57 = vpop.f32.mrf.mxu0 }
 0x49a   : > { %v1939_v58 = vpop.f32.mrf.mxu1 }
 0x49b   : > { %v1933_v59 = vpop.f32.mrf.mxu0 }
 0x49d   : > { %v1394_v60 = vpop.f32.mrf.mxu0 }
 0x49e   : > { %v1446_v62 = vcombine.low %v1302_v53, %v1394_v60  ;;  %v1447_v63 = vcombine.high %v1302_v53, %v1394_v60 }
 0x49f   : > { %v1944_v61 = vpop.f32.mrf.mxu0 }
 0x4a0   : > { %v1454_v7 = vrot.slane %v1446_v62, %v2581_v29  ;;  %v1461_v8 = vrot.slane %v1447_v63, %v2581_v29 }
 0x4a1   : > { %v1397_v1 = vpop.f32.mrf.mxu0  ;;  %v1440_v2 = vpop.f32.mrf.mxu1 }
 0x4a2   : > { %v1462_v3 = vcombine.low %v1348_v52, %v1440_v2  ;;  %v1463_v4 = vcombine.high %v1348_v52, %v1440_v2 }
 0x4a3   : > { %v1945_v5 = vpop.f32.mrf.mxu0  ;;  %v1950_v6 = vpop.f32.mrf.mxu1 }
 0x4a4   : > { %v1470_v9 = vrot.slane %v1462_v3, %v2581_v29  ;;  %v1477_v11 = vrot.slane %v1463_v4, %v2581_v29 }
 0x4a5   : > { %v1443_v12 = vpop.f32.mrf.mxu1 }
 0x4a6   : > { %v1478_v13 = vcombine.low %v1454_v7, %v1470_v9  ;;  %v1479_v14 = vcombine.high %v1454_v7, %v1470_v9  ;;  %v1494_v15 = vcombine.low %v1461_v8, %v1477_v11  ;;  %v1495_v16 = vcombine.high %v1461_v8, %v1477_v11 }
 0x4a7   : > { %v1951_v18 = vpop.f32.mrf.mxu1 }
 0x4a8   : > { %v1486_v19 = vrot.slane %v1478_v13, %v2593_v36  ;;  %v1493_v20 = vrot.slane %v1479_v14, %v2593_v36  ;;  %v1502_v21 = vrot.slane %v1494_v15, %v2593_v36  ;;  %v1509_v22 = vrot.slane %v1495_v16, %v2593_v36 }
 0x4aa   : > { %v1514_v23 = vcombine.low %v1486_v19, %v1493_v20  ;;  %v1853_v24 = vcombine.high %v1486_v19, %v1493_v20  ;;  %v1530_v25 = vcombine.low %v1502_v21, %v1509_v22  ;;  %v1854_v28 = vcombine.high %v1502_v21, %v1509_v22 }
 0x4ac   : > { %v1521_v31 = vrot.slane %v1514_v23, %v2581_v29  ;;  %v1529_v32 = vrot.slane %v1853_v24, %v2581_v29  ;;  %v1537_v34 = vrot.slane %v1530_v25, %v2581_v29  ;;  %v1545_v35 = vrot.slane %v1854_v28, %v2581_v29 }
 0x4ae   : > { %v1547_v37 = vcombine.high %v1521_v31, %v1529_v32  ;;  %v1563_v38 = vcombine.high %v1537_v34, %v1545_v35  ;;  %v1546_v39 = vcombine.low %v1521_v31, %v1529_v32  ;;  %v1562_v10 = vcombine.low %v1537_v34, %v1545_v35 }
 0x4b0   : > { %v1561_v0 = vrot.slane %v1547_v37, %v2593_v36  ;;  %v1577_v33 = vrot.slane %v1563_v38, %v2593_v36  ;;  %v1554_v40 = vrot.slane %v1546_v39, %v2593_v36  ;;  %v1570_v26 = vrot.slane %v1562_v10, %v2593_v36 }
 0x4b2   : > { %v1580_v41 = vcombine.low %v1561_v0, %v1577_v33  ;;  %v1579_v27 = vcombine.high %v1554_v40, %v1570_v26  ;;  %v1578_v42 = vcombine.low %v1554_v40, %v1570_v26  ;;  %v1581_v29 = vcombine.high %v1561_v0, %v1577_v33 }
 0x4b4   : > { %1587 = vrot.lane.b32.xlu0 %v1580_v41, %s2336_s17  ;;  %1583 = vrot.lane.b32.xlu1 %v1579_v27, %s2337_s26 }
 0x4b8   : > { %1591 = vrot.lane.b32.xlu1 %v1581_v29, %s2338_s0 }
 0x526   : > { %v1584_v43 = vpop.permute.xlu1 %1583  ;;  %v1588_v44 = vpop.permute.xlu0 %1587 }
 0x527   : > { %v1594_v46 = vsel %vm1024_vm3, %v1578_v42, %v1584_v43 }
 0x528   : > { %v1596_v36 = vsel %vm1595_vm5, %v1594_v46, %v1588_v44 }
 0x52a   : > { %v1592_v45 = vpop.permute.xlu1 %1591 }
 0x52b   : > { %v1598_v47 = vsel %vm1597_vm6, %v1596_v36, %v1592_v45 }
 0x52c   : > { %v1599_v48 = vpack.c.bf16 %v1598_v47, %v1598_v47 }
 0x52e   : > { %1957 = vmatmul.mubr.msk.bf16.vlgmr.msra.gmra.mxu0 %vm447_vm1, %v1599_v48 }
 0x5ee   : > { %v1660_v50 = vpop.f32.mrf.mxu0 }
 0x5ef   : > { %v1661_v51 = vadd.f32 %v1855_v49, %v1660_v50 }
 0x5f0   : > { %v1958_v52 = vpop.f32.mrf.mxu0 }
 0x5f1   : > { %1666 = vst.msk [vmem:[%s417_s15] sm:$0xff] %vm447_vm1, %v1661_v51 }
 0x5f2   : > { %v1663_v53 = vpop.f32.mrf.mxu0 }
 0x5f3   : > { %2240 = shalt.err (!%p2237_p2)
}
 0x5f4   : > { %s2241_s24 = scalar_lea.hbm %s2739_s20, 128  ;;  %s2245_s26 = scalar_lea.hbm %s2796_s8, 256 }
 0x5f5   : > { %p2242_p4 = scmp.ne.s32.totalorder %s2739_s20, %s2241_s24  ;;  %p2246_p7 = scmp.lt.s32.totalorder %s2739_s20, %s2796_s8 }
 0x5f6   : > { %p2247_p6 = scmp.lt.s32.totalorder %s2245_s26, %s2241_s24 }
 0x5f7   : > { %p2243_p1 = pnand %p2242_p4, %p2481_p5 }
 0x5f8   : > { %p2248_p12 = por %p2247_p6, %p2246_p7 }
 0x5f9   : > { %p2244_p8 = pneg %p2243_p1 }
 0x5fb   : > { %p2249_p0 = pnand %p2248_p12, %p2244_p8 }
 0x5fd   : > { %2252 = shalt.err (!%p2249_p0)
}
 0x5fe   : > { %1976 = dma.vmem_to_hbm [thread:$0]  (%p2481_p5), %s2741_s19, 128, %s2739_s20, %s1668_s21   ;;  %v1959_v54 = vpop.f32.mrf.mxu0 }
 0x5ff PF: > { %s2823_s22 = sld [smem:[#allocation19_spill]]  ;;  %s1694_s23 = sand.u32 1, %s2299_s27  }
 0x600   : > { %p2825_p10 = scmp.ge.s32.totalorder %s2319_s10, 2  ;;  %s1695_s4 = scalar_lea.sflag [#allocation6], %s1694_s23 }
 0x605   : > { %p2824_p3 = scmp.ne.s32.totalorder %s2823_s22, 0 }
 0x607   : > { %p1996_p11 = pnand %p2825_p10, %p2824_p3 }
 0x609   : > { %p1997_p9 = pneg %p1996_p11 }
 0x60b   : > { %2294 = dma.done.wait (%p1997_p9), %s1695_s4, 128  }
 0x60c   : > { %2296 = vsyncadd (%p1997_p9), %s1695_s4, 4294967168  ;;  %s28_s10 = sadd.s32 1, %s2319_s10   ;;  %s2826_s18 = sld [smem:[#allocation20_spill]] }
 0x60d   : > { %p25_p13 = scmp.ge.s32.totalorder %s28_s10, 4   ;;  %s2827_s27 = smov %s2303_s28 }
 0x60e   : > { %s2828_s28 = smov %s2307_s29  ;;  %s2829_s29 = smov %s2493_s25 }
 0x60f   : > { %s2830_s30 = smov %s2315_s9  ;;  %27 = sbr.rel (!%p25_p13) target bundleno = 14 (0xe), region = 126 }
 0x612   : > { %s2831_s9 = smov %s2826_s18 }
 0x614   :  { %1700 = vsyncpa [#allocation5], 1 }
 0x615   :  { %1702 = vsyncpa [#allocation5 + $0x1], 1 }
 0x616   :  { %1703 = vsyncpa [#allocation8], 1 }
 0x617   :  { %1705 = vsyncpa [#allocation8 + $0x1], 1 }
 0x618   :  { %1706 = vsyncpa [#allocation11], 1 }
 0x619   :  { %1707 = vsyncpa [#allocation6], 1 }
 0x61a   :  { %1709 = vsyncpa [#allocation6 + $0x1], 1 }

</bundles_post_ra>
